<compile_context>
chip_gen: v7x
topology: tpu7x:2x2x1
jax: 0.10.0
libtpu: 0.0.40
codegen_flags: <defaults>
</compile_context>

<pallas_src>
import functools
import math

import jax
import jax.numpy as jnp
from jax.experimental import pallas as pl
from jax.experimental.pallas import tpu as pltpu

_LANE = 128        # vreg lane width
_BATCH_ALIGN = 16  # bf16 sublane pack (also a multiple of f32's 8)


def _round_up(x: int, m: int) -> int:
    return (x + m - 1) // m * m


def _vmem_capacity_bytes() -> int:
    """Generation-aware physical VMEM per core (v5e/v6e 128 MiB, v7x 64 MiB)."""
    try:
        return int(pltpu.get_tpu_info().vmem_capacity_bytes)
    except Exception:  # query unavailable (e.g. interpret mode / old jax)
        try:
            kind = jax.devices()[0].device_kind.lower()
        except Exception:
            kind = ""
        return (64 << 20) if "v7" in kind else (128 << 20)


def _default_bf16_activations() -> bool:
    """bf16 VALU exists on v6e/v7x but not on v5* -> keep f32 ReLU there."""
    try:
        kind = jax.devices()[0].device_kind.lower()
    except Exception:
        return True
    return "v5" not in kind


# --------------------------------------------------------------------------
# Kernel body
# --------------------------------------------------------------------------
def _make_mlp_kernel(n_linear: int, bf16_activations: bool):
    """Fused-MLP kernel body for `n_linear` Linear layers.

    Ref order: x_ref, (w_0, b_0), ..., (w_{n-1}, b_{n-1}), o_ref.
    ReLU follows every Linear except the last. x / weights arrive in bf16
    (MXU operands); matmul accumulates in f32; bias add stays in f32.
    """

    def kernel(*refs):
        x_ref = refs[0]
        o_ref = refs[-1]
        h = x_ref[...]                                    # bf16 tile, no cast
        out = None
        for i in range(n_linear):
            w = refs[1 + 2 * i][...]                      # bf16 (fan_in_p, fan_out_p)
            b = refs[2 + 2 * i][...]                      # f32  (1, fan_out_p)
            acc = jnp.dot(h, w, preferred_element_type=jnp.float32) + b
            if i < n_linear - 1:
                if bf16_activations:
                    # packed bf16 ReLU on v6e/v7x; cast folded in
                    h = jnp.maximum(acc.astype(jnp.bfloat16), 0)
                else:
                    # v5e: f32 VPU ReLU, then round to bf16 for the next MXU op
                    h = jnp.maximum(acc, 0.0).astype(jnp.bfloat16)
            else:
                out = acc
        o_ref[...] = out.astype(o_ref.dtype)

    return kernel


# --------------------------------------------------------------------------
# One-time parameter preparation: lane-padding + bf16 cast (NOT per-call)
# --------------------------------------------------------------------------
def prepare_params(params, *, weight_dtype=jnp.bfloat16):
    """Zero-pad every fan_out (and subsequent fan_in) to a multiple of 128
    lanes and cast weights to `weight_dtype`. Biases stay f32.

    Zero padding is semantics-preserving: padded hidden channels get zero
    weight columns and zero bias, stay exactly 0 through ReLU, and contribute
    nothing downstream; padded output columns are sliced away by the wrapper.
    """
    # TODO(synk): optionally lane-pad the first-layer fan_in (and x) to a
    # multiple of 128 for mid-sized non-128-multiple in_size; negligible here.
    padded = []
    prev_in = params[0][0].shape[0]          # input feature dim left unpadded
    for (w, b) in params:
        fan_in, fan_out = w.shape
        out_pad = _round_up(fan_out, _LANE)
        w_p = jnp.zeros((prev_in, out_pad), weight_dtype)
        w_p = w_p.at[:fan_in, :fan_out].set(w.astype(weight_dtype))
        b_p = jnp.zeros((1, out_pad), jnp.float32)
        b_p = b_p.at[:, :fan_out].set(b.reshape(1, -1).astype(jnp.float32))
        padded.append((w_p, b_p))
        prev_in = out_pad
    return padded


# --------------------------------------------------------------------------
# Wrapper (jit-friendly; takes already-prepared params)
# --------------------------------------------------------------------------
def mlp_forward(x, pparams, out_size, *, batch_tile: int = 256,
                bf16_activations=None, single_buffer_weights: bool = True):
    """Runs the fused MLP Pallas kernel.

    x:        (B, in_size) float32 (cast to bf16 once here)
    pparams:  output of prepare_params (lane-padded bf16 weights, f32 biases)
    out_size: true (unpadded) output width
    """
    B, in_size = x.shape
    n_linear = len(pparams)
    out_pad = pparams[-1][0].shape[1]
    assert pparams[0][0].shape[0] == in_size, "params prepared for a different in_size"

    if bf16_activations is None:
        bf16_activations = _default_bf16_activations()

    # Single cheap cast: bf16 input halves the per-tile DMA and removes the
    # in-kernel casts. Numerically identical to the reference, which rounds
    # first-layer activations to bf16 before the matmul.
    x = x.astype(jnp.bfloat16)

    # Batch tile: 16-aligned, capped so the grid has >= 2 steps when possible
    # (keeps both v7x TensorCores busy, gives the pipeline steps to overlap).
    # No batch padding: grid = cdiv; ragged last tile rows are discarded.
    tb_cap = _round_up(max(batch_tile, _BATCH_ALIGN), _BATCH_ALIGN)
    two_step = _round_up(pl.cdiv(B, 2), _BATCH_ALIGN)
    tb = max(_BATCH_ALIGN, min(tb_cap, two_step))
    steps = pl.cdiv(B, tb)
    grid = (steps,)

    # ---- generation-aware VMEM budget --------------------------------------
    cap = _vmem_capacity_bytes()
    soft_cap = int(cap * 0.8)
    weight_bytes = sum(int(w.size) * w.dtype.itemsize +
                       int(b.size) * b.dtype.itemsize for (w, b) in pparams)
    wfactor = 1 if single_buffer_weights else 2
    io_tile_bytes = 3 * tb * in_size * 2 + 2 * tb * out_pad * 4
    max_width = max(w.shape[1] for (w, _) in pparams)
    act_bytes = 4 * tb * max_width * 4                          # temp headroom
    est = wfactor * weight_bytes + io_tile_bytes + act_bytes
    if est > soft_cap:
        # TODO(synk): stream weight tiles over an extra 'arbitrary' grid axis
        # (K/N tiling + f32 VMEM accumulator, double-buffered weight tiles)
        # instead of failing once the all-weights-resident footprint exceeds a
        # single core's VMEM (v7x: 64 MiB).
        raise ValueError(
            f"resident-weight MLP needs ~{est >> 20} MiB VMEM "
            f"(> {soft_cap >> 20} MiB on this chip); tile the weights.")
    vmem_limit = int(min(cap, max(32 << 20, 2 * est)))

    kernel = _make_mlp_kernel(n_linear, bf16_activations)
    out_shape = jax.ShapeDtypeStruct((B, out_pad), jnp.float32)
    cparams = pltpu.CompilerParams(dimension_semantics=("parallel",),
                                   vmem_limit_bytes=vmem_limit)

    flat_args = [x]
    for (w, b) in pparams:
        flat_args.extend([w, b])

    def _launch(use_buffering: bool):
        x_kw, w_kw = {}, {}
        if use_buffering:
            if steps >= 2:
                # Deeper input pipeline is cheap (tb*in_size bf16) and hides
                # the x DMA under the small per-step compute.
                x_kw = {"pipeline_mode": pl.Buffered(min(3, steps))}
            # Constant (weight/bias) blocks never get re-DMA'd; a single
            # buffer halves their resident VMEM footprint.
            w_kw = {"pipeline_mode": pl.Buffered(1)}
        in_specs = [pl.BlockSpec((tb, in_size), lambda i: (i, 0), **x_kw)]
        for (w, b) in pparams:
            in_specs.append(pl.BlockSpec(w.shape, lambda i: (0, 0), **w_kw))
            in_specs.append(pl.BlockSpec(b.shape, lambda i: (0, 0), **w_kw))
        out_spec = pl.BlockSpec((tb, out_pad), lambda i: (i, 0))
        return pl.pallas_call(
            kernel,
            out_shape=out_shape,
            grid=grid,
            in_specs=in_specs,
            out_specs=out_spec,
            compiler_params=cparams,
        )(*flat_args)

    if single_buffer_weights:
        try:
            out_p = _launch(True)
        except (TypeError, NotImplementedError, pltpu.LoweringException):
            # Narrowed compat fallback: only pipeline_mode support issues land
            # here; anything else propagates.
            out_p = _launch(False)
    else:
        out_p = _launch(False)

    return out_p[:, :out_size]


# --------------------------------------------------------------------------
# Init + reference
# --------------------------------------------------------------------------
def init_params(key, in_size: int, out_size: int, layers: int, nodes: int):
    """PyTorch-Linear-style uniform(-1/sqrt(fan_in), 1/sqrt(fan_in)) init.
    Weights stored as (fan_in, fan_out); biases as (1, fan_out)."""
    dims = [(in_size, nodes)] + [(nodes, nodes)] * layers + [(nodes, out_size)]
    params = []
    for (fan_in, fan_out) in dims:
        key, kw, kb = jax.random.split(key, 3)
        bound = 1.0 / math.sqrt(fan_in)
        w = jax.random.uniform(kw, (fan_in, fan_out), jnp.float32, -bound, bound)
        b = jax.random.uniform(kb, (1, fan_out), jnp.float32, -bound, bound)
        params.append((w, b))
    return params


def mlp_reference(x, params, weight_dtype=jnp.bfloat16):
    """Reference mirroring the kernel math (bf16 MXU operands, f32 accum).
    NOTE: this intentionally matches the bf16-rounded kernel, not the exact
    f32 PyTorch Linear; expect ~1e-2-level deviation from the torch Model."""
    h = x.astype(jnp.float32)
    n = len(params)
    for i, (w, b) in enumerate(params):
        wq = w.astype(weight_dtype).astype(jnp.float32)
        hq = h.astype(weight_dtype).astype(jnp.float32)
        h = hq @ wq + b.reshape(1, -1).astype(jnp.float32)
        if i < n - 1:
            h = jnp.maximum(h, 0.0)
    return h


if __name__ == "__main__":
    # Shapes consistent with the module defaults: Model(in_size=8, out_size=4,
    # layers=2, nodes=64). Batch chosen as a non-multiple of 8/16/tb to
    # exercise the ragged last tile.
    in_size, out_size, layers, nodes = 8, 4, 2, 64
    batch = 100

    key = jax.random.PRNGKey(0)
    key, kx = jax.random.split(key)
    x = jax.random.normal(kx, (batch, in_size), jnp.float32)
    params = init_params(key, in_size, out_size, layers, nodes)

    # ONE-TIME prep (pad to 128 lanes + bf16 cast) and a jitted forward, so
    # nothing is re-padded / re-traced per call.
    pparams = prepare_params(params)
    fwd = jax.jit(functools.partial(mlp_forward, out_size=out_size))

    try:
        out = jax.block_until_ready(fwd(x, pparams))
    except Exception:
        # Runtime/compile compat fallback without the optional pipeline_mode
        # hints. Unrelated errors still surface: the plain path would fail too
        # and re-raise here.
        fwd = jax.jit(functools.partial(mlp_forward, out_size=out_size,
                                        single_buffer_weights=False))
        out = jax.block_until_ready(fwd(x, pparams))

    ref = mlp_reference(x, params)
    assert out.shape == (batch, out_size)
    max_err = float(jnp.max(jnp.abs(out - ref)))
    assert jnp.allclose(out, ref, atol=2e-2, rtol=2e-2), (
        f"mismatch vs reference, max abs err {max_err}")

    print("KERNEL_OK")
</pallas_src>

<mosaic_0001>
module attributes {stable_mosaic.version = 11 : i64} {
  func.func @kernel(%arg0: i32, %arg1: memref<64x8xbf16, #tpu.memory_space<vmem>>, %arg2: memref<8x128xbf16, #tpu.memory_space<vmem>>, %arg3: memref<1x128xf32, #tpu.memory_space<vmem>>, %arg4: memref<128x128xbf16, #tpu.memory_space<vmem>>, %arg5: memref<1x128xf32, #tpu.memory_space<vmem>>, %arg6: memref<128x128xbf16, #tpu.memory_space<vmem>>, %arg7: memref<1x128xf32, #tpu.memory_space<vmem>>, %arg8: memref<128x128xbf16, #tpu.memory_space<vmem>>, %arg9: memref<1x128xf32, #tpu.memory_space<vmem>>, %arg10: memref<64x128xf32, #tpu.memory_space<vmem>>) attributes {dimension_semantics = [#tpu.dimension_semantics<parallel>], iteration_bounds = array<i64: 2>, scalar_prefetch = 0 : i64, scratch_operands = 0 : i64, tpu.core_type = #tpu.core_type<tc>, window_params = [{pipeline_mode = #tpu.pipeline_mode<double_buffered>, transform_indices = @transform_0, window_bounds = array<i64: 64, 8>}, {pipeline_mode = #tpu.pipeline_mode<synchronous>, transform_indices = @transform_1, window_bounds = array<i64: 8, 128>}, {pipeline_mode = #tpu.pipeline_mode<synchronous>, transform_indices = @transform_2, window_bounds = array<i64: 1, 128>}, {pipeline_mode = #tpu.pipeline_mode<synchronous>, transform_indices = @transform_3, window_bounds = array<i64: 128, 128>}, {pipeline_mode = #tpu.pipeline_mode<synchronous>, transform_indices = @transform_4, window_bounds = array<i64: 1, 128>}, {pipeline_mode = #tpu.pipeline_mode<synchronous>, transform_indices = @transform_5, window_bounds = array<i64: 128, 128>}, {pipeline_mode = #tpu.pipeline_mode<synchronous>, transform_indices = @transform_6, window_bounds = array<i64: 1, 128>}, {pipeline_mode = #tpu.pipeline_mode<synchronous>, transform_indices = @transform_7, window_bounds = array<i64: 128, 128>}, {pipeline_mode = #tpu.pipeline_mode<synchronous>, transform_indices = @transform_8, window_bounds = array<i64: 1, 128>}, {transform_indices = @transform_9, window_bounds = array<i64: 64, 128>}]} {
    %c0 = arith.constant 0 : index
    %c0_0 = arith.constant 0 : index
    %0 = vector.load %arg1[%c0, %c0_0] : memref<64x8xbf16, #tpu.memory_space<vmem>>, vector<64x8xbf16>
    %c0_1 = arith.constant 0 : index
    %c0_2 = arith.constant 0 : index
    %1 = vector.load %arg2[%c0_1, %c0_2] : memref<8x128xbf16, #tpu.memory_space<vmem>>, vector<8x128xbf16>
    %c0_3 = arith.constant 0 : index
    %c0_4 = arith.constant 0 : index
    %2 = vector.load %arg3[%c0_3, %c0_4] : memref<1x128xf32, #tpu.memory_space<vmem>>, vector<1x128xf32>
    %cst = arith.constant dense<0.000000e+00> : vector<64x128xf32>
    %3 = tpu.matmul %0, %1, %cst {dimension_numbers = #tpu.dot_dimension_numbers<[1], [0], [0], [1], [0, 0, 1, 1], [], []>} : vector<64x8xbf16>, vector<8x128xbf16>, vector<64x128xf32> -> vector<64x128xf32>
    %4 = vector.broadcast %2 : vector<1x128xf32> to vector<64x128xf32>
    %5 = arith.addf %3, %4 : vector<64x128xf32>
    %6 = arith.truncf %5 : vector<64x128xf32> to vector<64x128xbf16>
    %cst_5 = arith.constant 0.000000e+00 : bf16
    %7 = vector.broadcast %cst_5 : bf16 to vector<64x128xbf16>
    %8 = arith.maximumf %6, %7 : vector<64x128xbf16>
    %c0_6 = arith.constant 0 : index
    %c0_7 = arith.constant 0 : index
    %9 = vector.load %arg4[%c0_6, %c0_7] : memref<128x128xbf16, #tpu.memory_space<vmem>>, vector<128x128xbf16>
    %c0_8 = arith.constant 0 : index
    %c0_9 = arith.constant 0 : index
    %10 = vector.load %arg5[%c0_8, %c0_9] : memref<1x128xf32, #tpu.memory_space<vmem>>, vector<1x128xf32>
    %cst_10 = arith.constant dense<0.000000e+00> : vector<64x128xf32>
    %11 = tpu.matmul %8, %9, %cst_10 {dimension_numbers = #tpu.dot_dimension_numbers<[1], [0], [0], [1], [0, 0, 1, 1], [], []>} : vector<64x128xbf16>, vector<128x128xbf16>, vector<64x128xf32> -> vector<64x128xf32>
    %12 = vector.broadcast %10 : vector<1x128xf32> to vector<64x128xf32>
    %13 = arith.addf %11, %12 : vector<64x128xf32>
    %14 = arith.truncf %13 : vector<64x128xf32> to vector<64x128xbf16>
    %cst_11 = arith.constant 0.000000e+00 : bf16
    %15 = vector.broadcast %cst_11 : bf16 to vector<64x128xbf16>
    %16 = arith.maximumf %14, %15 : vector<64x128xbf16>
    %c0_12 = arith.constant 0 : index
    %c0_13 = arith.constant 0 : index
    %17 = vector.load %arg6[%c0_12, %c0_13] : memref<128x128xbf16, #tpu.memory_space<vmem>>, vector<128x128xbf16>
    %c0_14 = arith.constant 0 : index
    %c0_15 = arith.constant 0 : index
    %18 = vector.load %arg7[%c0_14, %c0_15] : memref<1x128xf32, #tpu.memory_space<vmem>>, vector<1x128xf32>
    %cst_16 = arith.constant dense<0.000000e+00> : vector<64x128xf32>
    %19 = tpu.matmul %16, %17, %cst_16 {dimension_numbers = #tpu.dot_dimension_numbers<[1], [0], [0], [1], [0, 0, 1, 1], [], []>} : vector<64x128xbf16>, vector<128x128xbf16>, vector<64x128xf32> -> vector<64x128xf32>
    %20 = vector.broadcast %18 : vector<1x128xf32> to vector<64x128xf32>
    %21 = arith.addf %19, %20 : vector<64x128xf32>
    %22 = arith.truncf %21 : vector<64x128xf32> to vector<64x128xbf16>
    %cst_17 = arith.constant 0.000000e+00 : bf16
    %23 = vector.broadcast %cst_17 : bf16 to vector<64x128xbf16>
    %24 = arith.maximumf %22, %23 : vector<64x128xbf16>
    %c0_18 = arith.constant 0 : index
    %c0_19 = arith.constant 0 : index
    %25 = vector.load %arg8[%c0_18, %c0_19] : memref<128x128xbf16, #tpu.memory_space<vmem>>, vector<128x128xbf16>
    %c0_20 = arith.constant 0 : index
    %c0_21 = arith.constant 0 : index
    %26 = vector.load %arg9[%c0_20, %c0_21] : memref<1x128xf32, #tpu.memory_space<vmem>>, vector<1x128xf32>
    %cst_22 = arith.constant dense<0.000000e+00> : vector<64x128xf32>
    %27 = tpu.matmul %24, %25, %cst_22 {dimension_numbers = #tpu.dot_dimension_numbers<[1], [0], [0], [1], [0, 0, 1, 1], [], []>} : vector<64x128xbf16>, vector<128x128xbf16>, vector<64x128xf32> -> vector<64x128xf32>
    %28 = vector.broadcast %26 : vector<1x128xf32> to vector<64x128xf32>
    %29 = arith.addf %27, %28 : vector<64x128xf32>
    %c0_23 = arith.constant 0 : index
    %c0_24 = arith.constant 0 : index
    %30 = vector.load %arg10[%c0_23, %c0_24] : memref<64x128xf32, #tpu.memory_space<vmem>>, vector<64x128xf32>
    tpu.vector_store %arg10[%c0_23, %c0_24], %29 {strides = array<i32>} : memref<64x128xf32, #tpu.memory_space<vmem>>, vector<64x128xf32>,
    return
  }
  func.func @transform_0(%arg0: i32) -> (i32, i32) {
    %c0_i32 = arith.constant 0 : i32
    %c0_i32_0 = arith.constant 0 : i32
    return %arg0, %c0_i32 : i32, i32
  }
  func.func @transform_1(%arg0: i32) -> (i32, i32) {
    %c0_i32 = arith.constant 0 : i32
    %c0_i32_0 = arith.constant 0 : i32
    %c0_i32_1 = arith.constant 0 : i32
    return %c0_i32, %c0_i32_0 : i32, i32
  }
  func.func @transform_2(%arg0: i32) -> (i32, i32) {
    %c0_i32 = arith.constant 0 : i32
    %c0_i32_0 = arith.constant 0 : i32
    %c0_i32_1 = arith.constant 0 : i32
    return %c0_i32, %c0_i32_0 : i32, i32
  }
  func.func @transform_3(%arg0: i32) -> (i32, i32) {
    %c0_i32 = arith.constant 0 : i32
    %c0_i32_0 = arith.constant 0 : i32
    %c0_i32_1 = arith.constant 0 : i32
    return %c0_i32, %c0_i32_0 : i32, i32
  }
  func.func @transform_4(%arg0: i32) -> (i32, i32) {
    %c0_i32 = arith.constant 0 : i32
    %c0_i32_0 = arith.constant 0 : i32
    %c0_i32_1 = arith.constant 0 : i32
    return %c0_i32, %c0_i32_0 : i32, i32
  }
  func.func @transform_5(%arg0: i32) -> (i32, i32) {
    %c0_i32 = arith.constant 0 : i32
    %c0_i32_0 = arith.constant 0 : i32
    %c0_i32_1 = arith.constant 0 : i32
    return %c0_i32, %c0_i32_0 : i32, i32
  }
  func.func @transform_6(%arg0: i32) -> (i32, i32) {
    %c0_i32 = arith.constant 0 : i32
    %c0_i32_0 = arith.constant 0 : i32
    %c0_i32_1 = arith.constant 0 : i32
    return %c0_i32, %c0_i32_0 : i32, i32
  }
  func.func @transform_7(%arg0: i32) -> (i32, i32) {
    %c0_i32 = arith.constant 0 : i32
    %c0_i32_0 = arith.constant 0 : i32
    %c0_i32_1 = arith.constant 0 : i32
    return %c0_i32, %c0_i32_0 : i32, i32
  }
  func.func @transform_8(%arg0: i32) -> (i32, i32) {
    %c0_i32 = arith.constant 0 : i32
    %c0_i32_0 = arith.constant 0 : i32
    %c0_i32_1 = arith.constant 0 : i32
    return %c0_i32, %c0_i32_0 : i32, i32
  }
  func.func @transform_9(%arg0: i32) -> (i32, i32) {
    %c0_i32 = arith.constant 0 : i32
    %c0_i32_0 = arith.constant 0 : i32
    return %arg0, %c0_i32 : i32, i32
  }
}

module attributes {stable_mosaic.version = 11 : i64} {
  func.func @kernel(%arg0: i32, %arg1: memref<64x8xbf16, #tpu.memory_space<vmem>>, %arg2: memref<8x128xbf16, #tpu.memory_space<vmem>>, %arg3: memref<1x128xf32, #tpu.memory_space<vmem>>, %arg4: memref<128x128xbf16, #tpu.memory_space<vmem>>, %arg5: memref<1x128xf32, #tpu.memory_space<vmem>>, %arg6: memref<128x128xbf16, #tpu.memory_space<vmem>>, %arg7: memref<1x128xf32, #tpu.memory_space<vmem>>, %arg8: memref<128x128xbf16, #tpu.memory_space<vmem>>, %arg9: memref<1x128xf32, #tpu.memory_space<vmem>>, %arg10: memref<64x128xf32, #tpu.memory_space<vmem>>) attributes {dimension_semantics = [#tpu.dimension_semantics<parallel>], iteration_bounds = array<i64: 2>, scalar_prefetch = 0 : i64, scratch_operands = 0 : i64, tpu.core_type = #tpu.core_type<tc>, window_params = [{transform_indices = @transform_0, window_bounds = array<i64: 64, 8>}, {pipeline_mode = #tpu.pipeline_mode<synchronous>, transform_indices = @transform_1, window_bounds = array<i64: 8, 128>}, {pipeline_mode = #tpu.pipeline_mode<synchronous>, transform_indices = @transform_2, window_bounds = array<i64: 1, 128>}, {pipeline_mode = #tpu.pipeline_mode<synchronous>, transform_indices = @transform_3, window_bounds = array<i64: 128, 128>}, {pipeline_mode = #tpu.pipeline_mode<synchronous>, transform_indices = @transform_4, window_bounds = array<i64: 1, 128>}, {pipeline_mode = #tpu.pipeline_mode<synchronous>, transform_indices = @transform_5, window_bounds = array<i64: 128, 128>}, {pipeline_mode = #tpu.pipeline_mode<synchronous>, transform_indices = @transform_6, window_bounds = array<i64: 1, 128>}, {pipeline_mode = #tpu.pipeline_mode<synchronous>, transform_indices = @transform_7, window_bounds = array<i64: 128, 128>}, {pipeline_mode = #tpu.pipeline_mode<synchronous>, transform_indices = @transform_8, window_bounds = array<i64: 1, 128>}, {transform_indices = @transform_9, window_bounds = array<i64: 64, 128>}]} {
    %c0 = arith.constant 0 : index
    %c0_0 = arith.constant 0 : index
    %0 = vector.load %arg1[%c0, %c0_0] : memref<64x8xbf16, #tpu.memory_space<vmem>>, vector<64x8xbf16>
    %c0_1 = arith.constant 0 : index
    %c0_2 = arith.constant 0 : index
    %1 = vector.load %arg2[%c0_1, %c0_2] : memref<8x128xbf16, #tpu.memory_space<vmem>>, vector<8x128xbf16>
    %c0_3 = arith.constant 0 : index
    %c0_4 = arith.constant 0 : index
    %2 = vector.load %arg3[%c0_3, %c0_4] : memref<1x128xf32, #tpu.memory_space<vmem>>, vector<1x128xf32>
    %cst = arith.constant dense<0.000000e+00> : vector<64x128xf32>
    %3 = tpu.matmul %0, %1, %cst {dimension_numbers = #tpu.dot_dimension_numbers<[1], [0], [0], [1], [0, 0, 1, 1], [], []>} : vector<64x8xbf16>, vector<8x128xbf16>, vector<64x128xf32> -> vector<64x128xf32>
    %4 = vector.broadcast %2 : vector<1x128xf32> to vector<64x128xf32>
    %5 = arith.addf %3, %4 : vector<64x128xf32>
    %6 = arith.truncf %5 : vector<64x128xf32> to vector<64x128xbf16>
    %cst_5 = arith.constant 0.000000e+00 : bf16
    %7 = vector.broadcast %cst_5 : bf16 to vector<64x128xbf16>
    %8 = arith.maximumf %6, %7 : vector<64x128xbf16>
    %c0_6 = arith.constant 0 : index
    %c0_7 = arith.constant 0 : index
    %9 = vector.load %arg4[%c0_6, %c0_7] : memref<128x128xbf16, #tpu.memory_space<vmem>>, vector<128x128xbf16>
    %c0_8 = arith.constant 0 : index
    %c0_9 = arith.constant 0 : index
    %10 = vector.load %arg5[%c0_8, %c0_9] : memref<1x128xf32, #tpu.memory_space<vmem>>, vector<1x128xf32>
    %cst_10 = arith.constant dense<0.000000e+00> : vector<64x128xf32>
    %11 = tpu.matmul %8, %9, %cst_10 {dimension_numbers = #tpu.dot_dimension_numbers<[1], [0], [0], [1], [0, 0, 1, 1], [], []>} : vector<64x128xbf16>, vector<128x128xbf16>, vector<64x128xf32> -> vector<64x128xf32>
    %12 = vector.broadcast %10 : vector<1x128xf32> to vector<64x128xf32>
    %13 = arith.addf %11, %12 : vector<64x128xf32>
    %14 = arith.truncf %13 : vector<64x128xf32> to vector<64x128xbf16>
    %cst_11 = arith.constant 0.000000e+00 : bf16
    %15 = vector.broadcast %cst_11 : bf16 to vector<64x128xbf16>
    %16 = arith.maximumf %14, %15 : vector<64x128xbf16>
    %c0_12 = arith.constant 0 : index
    %c0_13 = arith.constant 0 : index
    %17 = vector.load %arg6[%c0_12, %c0_13] : memref<128x128xbf16, #tpu.memory_space<vmem>>, vector<128x128xbf16>
    %c0_14 = arith.constant 0 : index
    %c0_15 = arith.constant 0 : index
    %18 = vector.load %arg7[%c0_14, %c0_15] : memref<1x128xf32, #tpu.memory_space<vmem>>, vector<1x128xf32>
    %cst_16 = arith.constant dense<0.000000e+00> : vector<64x128xf32>
    %19 = tpu.matmul %16, %17, %cst_16 {dimension_numbers = #tpu.dot_dimension_numbers<[1], [0], [0], [1], [0, 0, 1, 1], [], []>} : vector<64x128xbf16>, vector<128x128xbf16>, vector<64x128xf32> -> vector<64x128xf32>
    %20 = vector.broadcast %18 : vector<1x128xf32> to vector<64x128xf32>
    %21 = arith.addf %19, %20 : vector<64x128xf32>
    %22 = arith.truncf %21 : vector<64x128xf32> to vector<64x128xbf16>
    %cst_17 = arith.constant 0.000000e+00 : bf16
    %23 = vector.broadcast %cst_17 : bf16 to vector<64x128xbf16>
    %24 = arith.maximumf %22, %23 : vector<64x128xbf16>
    %c0_18 = arith.constant 0 : index
    %c0_19 = arith.constant 0 : index
    %25 = vector.load %arg8[%c0_18, %c0_19] : memref<128x128xbf16, #tpu.memory_space<vmem>>, vector<128x128xbf16>
    %c0_20 = arith.constant 0 : index
    %c0_21 = arith.constant 0 : index
    %26 = vector.load %arg9[%c0_20, %c0_21] : memref<1x128xf32, #tpu.memory_space<vmem>>, vector<1x128xf32>
    %cst_22 = arith.constant dense<0.000000e+00> : vector<64x128xf32>
    %27 = tpu.matmul %24, %25, %cst_22 {dimension_numbers = #tpu.dot_dimension_numbers<[1], [0], [0], [1], [0, 0, 1, 1], [], []>} : vector<64x128xbf16>, vector<128x128xbf16>, vector<64x128xf32> -> vector<64x128xf32>
    %28 = vector.broadcast %26 : vector<1x128xf32> to vector<64x128xf32>
    %29 = arith.addf %27, %28 : vector<64x128xf32>
    %c0_23 = arith.constant 0 : index
    %c0_24 = arith.constant 0 : index
    %30 = vector.load %arg10[%c0_23, %c0_24] : memref<64x128xf32, #tpu.memory_space<vmem>>, vector<64x128xf32>
    tpu.vector_store %arg10[%c0_23, %c0_24], %29 {strides = array<i32>} : memref<64x128xf32, #tpu.memory_space<vmem>>, vector<64x128xf32>,
    return
  }
  func.func @transform_0(%arg0: i32) -> (i32, i32) {
    %c0_i32 = arith.constant 0 : i32
    %c0_i32_0 = arith.constant 0 : i32
    return %arg0, %c0_i32 : i32, i32
  }
  func.func @transform_1(%arg0: i32) -> (i32, i32) {
    %c0_i32 = arith.constant 0 : i32
    %c0_i32_0 = arith.constant 0 : i32
    %c0_i32_1 = arith.constant 0 : i32
    return %c0_i32, %c0_i32_0 : i32, i32
  }
  func.func @transform_2(%arg0: i32) -> (i32, i32) {
    %c0_i32 = arith.constant 0 : i32
    %c0_i32_0 = arith.constant 0 : i32
    %c0_i32_1 = arith.constant 0 : i32
    return %c0_i32, %c0_i32_0 : i32, i32
  }
  func.func @transform_3(%arg0: i32) -> (i32, i32) {
    %c0_i32 = arith.constant 0 : i32
    %c0_i32_0 = arith.constant 0 : i32
    %c0_i32_1 = arith.constant 0 : i32
    return %c0_i32, %c0_i32_0 : i32, i32
  }
  func.func @transform_4(%arg0: i32) -> (i32, i32) {
    %c0_i32 = arith.constant 0 : i32
    %c0_i32_0 = arith.constant 0 : i32
    %c0_i32_1 = arith.constant 0 : i32
    return %c0_i32, %c0_i32_0 : i32, i32
  }
  func.func @transform_5(%arg0: i32) -> (i32, i32) {
    %c0_i32 = arith.constant 0 : i32
    %c0_i32_0 = arith.constant 0 : i32
    %c0_i32_1 = arith.constant 0 : i32
    return %c0_i32, %c0_i32_0 : i32, i32
  }
  func.func @transform_6(%arg0: i32) -> (i32, i32) {
    %c0_i32 = arith.constant 0 : i32
    %c0_i32_0 = arith.constant 0 : i32
    %c0_i32_1 = arith.constant 0 : i32
    return %c0_i32, %c0_i32_0 : i32, i32
  }
  func.func @transform_7(%arg0: i32) -> (i32, i32) {
    %c0_i32 = arith.constant 0 : i32
    %c0_i32_0 = arith.constant 0 : i32
    %c0_i32_1 = arith.constant 0 : i32
    return %c0_i32, %c0_i32_0 : i32, i32
  }
  func.func @transform_8(%arg0: i32) -> (i32, i32) {
    %c0_i32 = arith.constant 0 : i32
    %c0_i32_0 = arith.constant 0 : i32
    %c0_i32_1 = arith.constant 0 : i32
    return %c0_i32, %c0_i32_0 : i32, i32
  }
  func.func @transform_9(%arg0: i32) -> (i32, i32) {
    %c0_i32 = arith.constant 0 : i32
    %c0_i32_0 = arith.constant 0 : i32
    return %arg0, %c0_i32 : i32, i32
  }
}

</mosaic_0001>

<bundles_post_ra>
// kernel: mlp_forward.1
= control target key start
LH: loop header
LB: loop body
LE: loop exit
PB: predicated region body
PF: predicated region fallthrough
CT: control target
= control target key end

     0   :  { %14 = vsyncpa [#allocation3], 0  ;;  %s1998_s0 = inlined_call_operand.vmem [shape: bf16[100,8], index: 0, kind: input, shape index: {}]   ;;  %s1999_s1 = inlined_call_operand.vmem [shape: bf16[8,128], index: 1, kind: input, shape index: {}]   ;;  %s2000_s2 = inlined_call_operand.vmem [shape: f32[1,128], index: 2, kind: input, shape index: {}]   ;;  %s2001_s3 = inlined_call_operand.vmem [shape: bf16[128,128], index: 3, kind: input, shape index: {}]   ;;  %s2002_s4 = inlined_call_operand.vmem [shape: f32[1,128], index: 4, kind: input, shape index: {}]   ;;  %s2003_s5 = inlined_call_operand.hbm [shape: bf16[128,128], index: 5, kind: input, shape index: {}]   ;;  %s2004_s6 = inlined_call_operand.vmem [shape: f32[1,128], index: 6, kind: input, shape index: {}]   ;;  %s2005_s7 = inlined_call_operand.hbm [shape: bf16[128,128], index: 7, kind: input, shape index: {}]   ;;  %s2006_s8 = inlined_call_operand.vmem [shape: f32[1,128], index: 8, kind: input, shape index: {}]   ;;  %s2007_s9 = inlined_call_operand.vmem [shape: f32[100,128], index: 9, kind: output, shape index: {}]  }
   0x1   :  { %15 = vsyncpa [#allocation5], 0  ;;  %s1762_s30 = smov 0   ;;  %s1764_s10 = smov 0  }
   0x2   :  { %s1766_s11 = smov 0  }
   0x3 LB: > { %s1775_s12 = sadd.s32 4294967295, %s1673_s11   ;;  %s1777_s13 = sadd.s32 1, %s1673_s11   ;;  %s1673_s11 = sphi %s1766_s11, %s2024_s11   ;;  %s1669_s10 = sphi %s1764_s10, %s2023_s10   ;;  %s1665_s30 = sphi %s1762_s30, %s2022_s30  }
   0x4   : > { %s219_s14 = ssub.s32 %s1673_s11, %s1777_s13  ;;  %s222_s15 = sadd.s32 1, %s1669_s10 }
   0x5   : > { %p220_p0 = scmp.eq.s32.totalorder %s219_s14, 0  ;;  %p232_p1 = scmp.ne.s32.totalorder %s1669_s10, %s1665_s30 }
   0x6   : > { %p233_p2 = scmp.eq.s32.totalorder %s1775_s12, 1  ;;  %p1209_p3 = scmp.ge.s32.totalorder %s1673_s11, 1 }
   0x7   : > { %s1785_s16 = scalar_select %p220_p0, %s1669_s10, %s222_s15  }
   0x8   : > { %p1787_p4 = por %p233_p2, %p232_p1  ;;  %p246_p5 = scmp.lt.s32.totalorder %s1673_s11, 3 }
   0x9   : > { %p2008_p6 = scmp.eq.s32.totalorder %s1775_s12, 0  ;;  %s1707_s19 = smov [#allocation2]  }
   0xa   : > { %s2010_s17 = scalar_select %p1787_p4, 1, 0 }
   0xb   : > { %p1792_p7 = pnand %p1209_p3, %p246_p5  ;;  %s270_s20 = sshll.u32 %s1707_s19, 4  ;;  %s271_s20 = int_to_ptr.vmem [resolvable:$true] %s270_s20 }
   0xc   : > { %s1708_s22 = smov [#allocation4]   ;;  %s1555_s26 = scalar_lea.hbm %s2003_s5, 1024 }
   0xd   : > { %s2011_s18 = scalar_select %p1792_p7, 1, 0 }
   0xe   : > { %p1423_p8 = pneg %p1792_p7  ;;  %s286_s23 = sshll.u32 %s1708_s22, 4  ;;  %s1804_s23 = int_to_ptr.vmem [resolvable:$true] %s286_s23 }
   0xf   : > { %p1556_p10 = scmp.ne.s32.totalorder %s2003_s5, %s1555_s26  ;;  %p1562_p0 = scmp.lt.u32.totalorder %s1555_s26, %s2003_s5 }
  0x10   : > { %p1800_p9 = pnand %p2008_p6, %p1423_p8 }
  0x12   : > { %p1557_p11 = pneg %p1800_p9 }
  0x14   : > { %p1558_p12 = pnand %p1557_p11, %p1556_p10 }
  0x16   : > { %p1559_p13 = pneg %p1558_p12 }
  0x18   : > { %p1564_p1 = pnand %p1562_p0, %p1559_p13 }
  0x1a   : > { %1567 = shalt.err (!%p1564_p1)
}
  0x1b   : > { %s1568_s14 = scalar_lea.vmem %s271_s20, 1024  ;;  %p1576_p8 = scmp.lt.s32.totalorder %s271_s20, %s271_s20 }
  0x1c   : > { %p1569_p2 = scmp.ne.s32.totalorder %s271_s20, %s1568_s14  ;;  %p1577_p6 = scmp.lt.s32.totalorder %s1568_s14, %s1568_s14 }
  0x1e   : > { %p1571_p3 = pnand %p1569_p2, %p1557_p11  ;;  %p1578_p4 = por %p1577_p6, %p1576_p8 }
  0x20   : > { %p1572_p5 = pneg %p1571_p3 }
  0x22   : > { %p1579_p7 = pnand %p1578_p4, %p1572_p5 }
  0x24   : > { %1582 = shalt.err (!%p1579_p7)
}
  0x25   : > { %s1709_s15 = smov 64   ;;  %s1710_s19 = smov 4  }
  0x26   : > { %1426 = dma.hbm_to_vmem [thread:$0]  (!%p1800_p9), %s2003_s5, 1024, %s271_s20, [#allocation3], %s1709_s15, %s1709_s15, %s1710_s19  }
  0x27   : > { %s1583_s27 = scalar_lea.hbm %s2005_s7, 1024 }
  0x28   : > { %p1584_p10 = scmp.ne.s32.totalorder %s2005_s7, %s1583_s27  ;;  %p1590_p7 = scmp.lt.u32.totalorder %s1583_s27, %s2005_s7 }
  0x2a   : > { %p1586_p4 = pnand %p1584_p10, %p1557_p11 }
  0x2c   : > { %p1587_p6 = pneg %p1586_p4 }
  0x2e   : > { %p1592_p12 = pnand %p1590_p7, %p1587_p6 }
  0x30   : > { %1595 = shalt.err (!%p1592_p12)
}
  0x31   : > { %s1596_s20 = scalar_lea.vmem %s1804_s23, 1024  ;;  %p1604_p2 = scmp.lt.s32.totalorder %s1804_s23, %s1804_s23 }
  0x32   : > { %p1597_p13 = scmp.ne.s32.totalorder %s1804_s23, %s1596_s20  ;;  %p1605_p3 = scmp.lt.s32.totalorder %s1596_s20, %s1596_s20 }
  0x34   : > { %p1599_p0 = pnand %p1597_p13, %p1557_p11  ;;  %p1606_p5 = por %p1605_p3, %p1604_p2 }
  0x36   : > { %p1600_p1 = pneg %p1599_p0 }
  0x38   : > { %p1607_p8 = pnand %p1606_p5, %p1600_p1 }
  0x3a   : > { %1610 = shalt.err (!%p1607_p8)
}
  0x3b   : > { %1429 = dma.hbm_to_vmem [thread:$0]  (!%p1800_p9), %s2005_s7, 1024, %s1804_s23, [#allocation5], %s1709_s15, %s1709_s15, %s1710_s19  }
  0x3c   : > { %p2013_p10 = scmp.ne.s32.totalorder %s2011_s18, 0 }
  0x3d   : > { %p2014_p4 = scmp.eq.s32.totalorder (!%p2013_p10), %s1775_s12, 0 }
  0x3e   : > { %322 = sbr.rel (%p2013_p10) target bundleno = 1023 (0x3ff), region = 56 }
  0x45   : > { %1656 = dma.done.wait (%p2014_p4), [#allocation3], 1024   ;;  %p2015_p11 = pmov %p2014_p4 }
  0x46   : > { %p2016_p6 = pmov %p2014_p4 }
  0x47   : > { %1658 = vsyncadd (%p2015_p11), [#allocation3], 4294966272 }
  0x48   : > { %1660 = dma.done.wait (%p2016_p6), [#allocation5], 1024   ;;  %p2017_p7 = pmov %p2014_p4 }
  0x49   : > { %s1864_s21 = sshll.u32 %s1775_s12, 3  ;;  %vm434_vm0 = vcmask 1043456   ;;  %vm421_vm1 = vcmask 64512   ;;  %v393_v0 = vld [vmem:[%s1999_s1] sm:$0xf]  ;;  %v1532_v6 = vld [vmem:[%s2001_s3 + $0x8] sm:$0xff]  }
  0x4a   : > { %1662 = vsyncadd (%p2017_p7), [#allocation5], 4294966272  ;;  %p370_p9 = scmp.lt.s32.totalorder %s1864_s21, 12  ;;  %1414 = vmatprep.subr.msk.bf16.mxu0 %vm434_vm0, %v393_v0  ;;  %v436_v1 = vsel %vm434_vm0, %v393_v0, 0  ;;  %v1531_v5 = vld [vmem:[%s2001_s3] sm:$0xff]   ;;  %v1533_v8 = vld [vmem:[%s2001_s3 + $0x10] sm:$0xff]  }
  0x4b   : > { %1317 = vmatpush3.bf16.msra.mxu0 %v436_v1  ;;  %1326 = vmatprep.subr.bf16.mxu1 %v1531_v5  ;;  %v1534_v9 = vld [vmem:[%s2001_s3 + $0x18] sm:$0xff]   ;;  %v1535_v10 = vld [vmem:[%s2001_s3 + $0x20] sm:$0xff]   ;;  %v1536_v11 = vld [vmem:[%s2001_s3 + $0x28] sm:$0xff]   ;;  %v1711_v32 = vmov 0   ;;  %p2018_p12 = scmp.ne.s32.totalorder %s2010_s17, 0 }
  0x4c   : > { %s371_s18 = scalar_select %p370_p9, %s1864_s21, 12  ;;  %1327 = vmatpush3.bf16.msra.mxu1 %v1531_v5  ;;  %v1537_v12 = vld [vmem:[%s2001_s3 + $0x30] sm:$0xff]   ;;  %v1538_v13 = vld [vmem:[%s2001_s3 + $0x38] sm:$0xff]   ;;  %v1539_v14 = vld [vmem:[#allocation2] sm:$0xff]  }
  0x4d   : > { %1328 = vmatprep.subr.bf16.mxu1 %v1532_v6  ;;  %v1540_v15 = vld [vmem:[#allocation2 + $0x8] sm:$0xff]   ;;  %1350 = vmatprep.subr.bf16.mxu0 %v1539_v14  ;;  %v1541_v16 = vld [vmem:[#allocation2 + $0x10] sm:$0xff]   ;;  %v1542_v17 = vld [vmem:[#allocation2 + $0x18] sm:$0xff]   ;;  %s1272_s27 = sshll.u32 (%p2018_p12), %s1775_s12, 6 }
  0x4e   : > { %s1218_s23 = sshll.u32 %s371_s18, 2  ;;  %v1543_v18 = vld [vmem:[#allocation2 + $0x20] sm:$0xff]   ;;  %v1544_v19 = vld [vmem:[#allocation2 + $0x28] sm:$0xff]   ;;  %v1545_v46 = vld [vmem:[#allocation2 + $0x30] sm:$0xff]   ;;  %s1944_s11 = scalar_lea.vmem (%p2018_p12), %s2007_s9, %s1272_s27  }
  0x4f   : > { %s373_s25 = scalar_lea.vmem %s1998_s0, %s1218_s23  ;;  %v1219_v21 = vld [vmem:[%s2000_s2] ss:$0 sm:$0xff]  ;;  %v1546_v47 = vld [vmem:[#allocation2 + $0x38] sm:$0xff]   ;;  %v1548_v49 = vld [vmem:[#allocation4 + $0x8] sm:$0xff]   ;;  %s362_s23 = sand.u32 1, %s1665_s30  }
  0x50   : > { %v1527_v2 = vld [vmem:[%s373_s25] sm:$0xff]   ;;  %v1528_v3 = vld [vmem:[%s373_s25 + $0x8] sm:$0xff]   ;;  %v1529_v4 = vld [vmem:[%s373_s25 + $0x10] sm:$0xff]   ;;  %1329 = vmatpush3.bf16.msra.mxu1 %v1532_v6  ;;  %s1216_s15 = sshll.u32 %s362_s23, 6  ;;  %s951_s30 = ssub.s32 (%p2018_p12), 13, %s1864_s21 }
  0x51   : > { %1318 = vmatprep.mubr.msk.bf16.mxu0 %vm421_vm1, %v1527_v2  ;;  %v1530_v7 = vld [vmem:[%s373_s25 + $0x18] sm:$0xff]   ;;  %1330 = vmatprep.subr.bf16.mxu1 %v1533_v8  ;;  %v1547_v48 = vld [vmem:[#allocation4] sm:$0xff]   ;;  %v1549_v50 = vld [vmem:[#allocation4 + $0x10] sm:$0xff]   ;;  %s1927_s26 = scalar_lea.vmem [#allocation6], %s1216_s15   ;;  %p952_p13 = scmp.lt.s32.totalorder (%p2018_p12), %s951_s30, 8 }
  0x52   : > { %1319 = vmatmul.mubr.msk.bf16.vlgmr.msra.gmra.mrb[0].mxu0 %vm421_vm1, %v1528_v3  ;;  %v1550_v51 = vld [vmem:[#allocation4 + $0x18] sm:$0xff]   ;;  %v1551_v52 = vld [vmem:[#allocation4 + $0x20] sm:$0xff]   ;;  %v1552_v53 = vld [vmem:[#allocation4 + $0x28] sm:$0xff]  }
  0x53   : > { %1322 = vmatprep.mubr.msk.bf16.mxu0 %vm421_vm1, %v1529_v4  ;;  %1351 = vmatpush3.bf16.msra.mxu0 %v1539_v14  ;;  %v1228_v55 = vld [vmem:[%s2002_s4] ss:$0 sm:$0xff] }
  0x54   : > { %1331 = vmatpush3.bf16.msra.mxu1 %v1533_v8  ;;  %1352 = vmatprep.subr.bf16.mxu0 %v1540_v15 }
  0x55   : > { %1332 = vmatprep.subr.bf16.mxu1 %v1534_v9 }
  0x57   : > { %1353 = vmatpush3.bf16.msra.mxu0 %v1540_v15  ;;  %v1553_v15 = vld [vmem:[#allocation4 + $0x30] sm:$0xff]  }
  0x58   : > { %1333 = vmatpush3.bf16.msra.mxu1 %v1534_v9  ;;  %1354 = vmatprep.subr.bf16.mxu0 %v1541_v16 }
  0x59   : > { %1334 = vmatprep.subr.bf16.mxu1 %v1535_v10 }
  0x5a   : > { %1323 = vmatmul.mubr.msk.bf16.gmra.mrb[4].mxu0 %vm421_vm1, %v1530_v7 }
  0x5b   : > { %1355 = vmatpush3.bf16.msra.mxu0 %v1541_v16  ;;  %v1554_v16 = vld [vmem:[#allocation4 + $0x38] sm:$0xff]  }
  0x5c   : > { %1335 = vmatpush3.bf16.msra.mxu1 %v1535_v10  ;;  %1356 = vmatprep.subr.bf16.mxu0 %v1542_v17 }
  0x5d   : > { %1336 = vmatprep.subr.bf16.mxu1 %v1536_v11 }
  0x5f   : > { %1357 = vmatpush3.bf16.msra.mxu0 %v1542_v17 }
  0x60   : > { %1337 = vmatpush3.bf16.msra.mxu1 %v1536_v11  ;;  %1358 = vmatprep.subr.bf16.mxu0 %v1543_v18 }
  0x61   : > { %1338 = vmatprep.subr.bf16.mxu1 %v1537_v12 }
  0x63   : > { %1359 = vmatpush3.bf16.msra.mxu0 %v1543_v18  ;;  %v1237_v18 = vld [vmem:[%s2004_s6] ss:$0 sm:$0xff] }
  0x64   : > { %1339 = vmatpush3.bf16.msra.mxu1 %v1537_v12  ;;  %1360 = vmatprep.subr.bf16.mxu0 %v1544_v19 }
  0x65   : > { %1340 = vmatprep.subr.bf16.mxu1 %v1538_v13 }
  0x67   : > { %1361 = vmatpush3.bf16.msra.mxu0 %v1544_v19 }
  0x68   : > { %1341 = vmatpush3.bf16.msra.mxu1 %v1538_v13  ;;  %1362 = vmatprep.subr.bf16.mxu0 %v1545_v46 }
  0x69   : > { %1398 = vmatprep.subr.bf16.mxu1 %v1547_v48 }
  0x6b   : > { %1363 = vmatpush3.bf16.msra.mxu0 %v1545_v46 }
  0x6c   : > { %1364 = vmatprep.subr.bf16.mxu0 %v1546_v47 }
  0x6f   : > { %1365 = vmatpush3.bf16.msra.mxu0 %v1546_v47 }
  0x70   : > { %1374 = vmatprep.subr.bf16.mxu0 %v1547_v48 }
 0x125   : > { %v1320_v20 = vpop.f32.mrb[0].mxu0 }
 0x126   : > { %v472_v22 = vpop.f32.mrb[1].mxu0  ;;  %v481_v24 = vadd.f32 %v1320_v20, %v1219_v21 }
 0x127   : > { %v1321_v23 = vpop.f32.mrb[2].mxu0  ;;  %v473_v27 = vadd.f32 %v1219_v21, %v472_v22 }
 0x128   : > { %v484_v25 = vadd.f32 %v1321_v23, %v1219_v21  ;;  %v475_v26 = vpop.f32.mrb[3].mxu0 }
 0x129   : > { %v476_v28 = vadd.f32 %v1219_v21, %v475_v26 }
 0x12a   : > { %v504_v29 = vpack.c.bf16 %v484_v25, %v481_v24 }
 0x12b   : > { %v503_v30 = vpack.c.bf16 %v476_v28, %v473_v27 }
 0x12c   : > { %v508_v35 = vmax.bf16 %v1711_v32, %v504_v29 }
 0x12d   : > { %v1324_v31 = vpop.f32.mrb[4].mxu0  ;;  %v507_v33 = vmax.bf16 %v1711_v32, %v503_v30 }
 0x12e   : > { %v488_v34 = vpop.f32.mrb[5].mxu0  ;;  %v497_v37 = vadd.f32 %v1324_v31, %v1219_v21 }
 0x12f   : > { %v1325_v36 = vpop.f32.mrb[6].mxu0  ;;  %1342 = vmatprep.mubr.bf16.mxu1 %v507_v33  ;;  %v489_v40 = vadd.f32 %v1219_v21, %v488_v34 }
 0x130   : > { %v500_v38 = vadd.f32 %v1325_v36, %v1219_v21  ;;  %v491_v39 = vpop.f32.mrb[7].mxu0  ;;  %1343 = vmatmul.mubr.bf16.vlgmr.msra.gmra.mrb[0].mxu1 %v508_v35 }
 0x131   : > { %v492_v41 = vadd.f32 %v1219_v21, %v491_v39  ;;  %1406 = vmatpush3.bf16.msra.mxu1 %v1547_v48 }
 0x132   : > { %v506_v42 = vpack.c.bf16 %v500_v38, %v497_v37  ;;  %1399 = vmatprep.subr.bf16.mxu1 %v1548_v49 }
 0x133   : > { %v505_v43 = vpack.c.bf16 %v492_v41, %v489_v40 }
 0x134   : > { %v510_v45 = vmax.bf16 %v1711_v32, %v506_v42 }
 0x135   : > { %v509_v44 = vmax.bf16 %v1711_v32, %v505_v43  ;;  %1407 = vmatpush3.bf16.msra.mxu1 %v1548_v49  ;;  %v1246_v43 = vld [vmem:[%s2006_s8] ss:$0 sm:$0xff] }
 0x136   : > { %1400 = vmatprep.subr.bf16.mxu1 %v1549_v50 }
 0x137   : > { %1346 = vmatprep.mubr.bf16.mxu1 %v509_v44 }
 0x138   : > { %1347 = vmatmul.mubr.bf16.gmra.mrb[4].mxu1 %v510_v45 }
 0x139   : > { %1408 = vmatpush3.bf16.msra.mxu1 %v1549_v50 }
 0x13a   : > { %1401 = vmatprep.subr.bf16.mxu1 %v1550_v51 }
 0x13d   : > { %1409 = vmatpush3.bf16.msra.mxu1 %v1550_v51 }
 0x13e   : > { %1402 = vmatprep.subr.bf16.mxu1 %v1551_v52 }
 0x141   : > { %1410 = vmatpush3.bf16.msra.mxu1 %v1551_v52 }
 0x142   : > { %1403 = vmatprep.subr.bf16.mxu1 %v1552_v53 }
 0x145   : > { %1411 = vmatpush3.bf16.msra.mxu1 %v1552_v53 }
 0x146   : > { %1404 = vmatprep.subr.bf16.mxu1 %v1553_v15 }
 0x149   : > { %1412 = vmatpush3.bf16.msra.mxu1 %v1553_v15 }
 0x14a   : > { %1405 = vmatprep.subr.bf16.mxu1 %v1554_v16 }
 0x14d   : > { %1413 = vmatpush3.bf16.msra.mxu1 %v1554_v16 }
 0x203   : > { %v1344_v54 = vpop.f32.mrb[0].mxu1 }
 0x204   : > { %v616_v56 = vpop.f32.mrb[1].mxu1  ;;  %v625_v58 = vadd.f32 %v1344_v54, %v1228_v55 }
 0x205   : > { %v1345_v57 = vpop.f32.mrb[2].mxu1  ;;  %v617_v61 = vadd.f32 %v1228_v55, %v616_v56 }
 0x206   : > { %v628_v59 = vadd.f32 %v1345_v57, %v1228_v55  ;;  %v619_v60 = vpop.f32.mrb[3].mxu1 }
 0x207   : > { %v620_v62 = vadd.f32 %v1228_v55, %v619_v60 }
 0x208   : > { %v648_v63 = vpack.c.bf16 %v628_v59, %v625_v58 }
 0x209   : > { %v647_v0 = vpack.c.bf16 %v620_v62, %v617_v61 }
 0x20a   : > { %v652_v3 = vmax.bf16 %v1711_v32, %v648_v63 }
 0x20b   : > { %v1348_v1 = vpop.f32.mrb[4].mxu1  ;;  %v651_v2 = vmax.bf16 %v1711_v32, %v647_v0 }
 0x20c   : > { %v632_v4 = vpop.f32.mrb[5].mxu1  ;;  %v641_v6 = vadd.f32 %v1348_v1, %v1228_v55 }
 0x20d   : > { %v1349_v5 = vpop.f32.mrb[6].mxu1  ;;  %1366 = vmatprep.mubr.bf16.mxu0 %v651_v2  ;;  %v633_v9 = vadd.f32 %v1228_v55, %v632_v4 }
 0x20e   : > { %v644_v7 = vadd.f32 %v1349_v5, %v1228_v55  ;;  %v635_v8 = vpop.f32.mrb[7].mxu1  ;;  %1367 = vmatmul.mubr.bf16.vlgmr.msra.gmra.mrb[8].mxu0 %v652_v3 }
 0x20f   : > { %v636_v10 = vadd.f32 %v1228_v55, %v635_v8  ;;  %1375 = vmatpush3.bf16.msra.mxu0 %v1547_v48 }
 0x210   : > { %v650_v11 = vpack.c.bf16 %v644_v7, %v641_v6  ;;  %1376 = vmatprep.subr.bf16.mxu0 %v1548_v49 }
 0x211   : > { %v649_v12 = vpack.c.bf16 %v636_v10, %v633_v9 }
 0x212   : > { %v654_v14 = vmax.bf16 %v1711_v32, %v650_v11 }
 0x213   : > { %v653_v13 = vmax.bf16 %v1711_v32, %v649_v12  ;;  %1377 = vmatpush3.bf16.msra.mxu0 %v1548_v49 }
 0x214   : > { %1378 = vmatprep.subr.bf16.mxu0 %v1549_v50 }
 0x215   : > { %1370 = vmatprep.mubr.bf16.mxu0 %v653_v13 }
 0x216   : > { %1371 = vmatmul.mubr.bf16.gmra.mrb[12].mxu0 %v654_v14 }
 0x217   : > { %1379 = vmatpush3.bf16.msra.mxu0 %v1549_v50 }
 0x218   : > { %1380 = vmatprep.subr.bf16.mxu0 %v1550_v51 }
 0x21b   : > { %1381 = vmatpush3.bf16.msra.mxu0 %v1550_v51 }
 0x21c   : > { %1382 = vmatprep.subr.bf16.mxu0 %v1551_v52 }
 0x21f   : > { %1383 = vmatpush3.bf16.msra.mxu0 %v1551_v52 }
 0x220   : > { %1384 = vmatprep.subr.bf16.mxu0 %v1552_v53 }
 0x223   : > { %1385 = vmatpush3.bf16.msra.mxu0 %v1552_v53 }
 0x224   : > { %1386 = vmatprep.subr.bf16.mxu0 %v1553_v15 }
 0x227   : > { %1387 = vmatpush3.bf16.msra.mxu0 %v1553_v15 }
 0x228   : > { %1388 = vmatprep.subr.bf16.mxu0 %v1554_v16 }
 0x22b   : > { %1389 = vmatpush3.bf16.msra.mxu0 %v1554_v16 }
 0x2e1   : > { %v1368_v17 = vpop.f32.mrb[8].mxu0 }
 0x2e2   : > { %v760_v19 = vpop.f32.mrb[9].mxu0  ;;  %v769_v21 = vadd.f32 %v1368_v17, %v1237_v18 }
 0x2e3   : > { %v1369_v20 = vpop.f32.mrb[10].mxu0  ;;  %v761_v24 = vadd.f32 %v1237_v18, %v760_v19 }
 0x2e4   : > { %v772_v22 = vadd.f32 %v1369_v20, %v1237_v18  ;;  %v763_v23 = vpop.f32.mrb[11].mxu0 }
 0x2e5   : > { %v764_v25 = vadd.f32 %v1237_v18, %v763_v23 }
 0x2e6   : > { %v792_v26 = vpack.c.bf16 %v772_v22, %v769_v21 }
 0x2e7   : > { %v791_v27 = vpack.c.bf16 %v764_v25, %v761_v24 }
 0x2e8   : > { %v796_v30 = vmax.bf16 %v1711_v32, %v792_v26 }
 0x2e9   : > { %v1372_v28 = vpop.f32.mrb[12].mxu0  ;;  %v795_v29 = vmax.bf16 %v1711_v32, %v791_v27 }
 0x2ea   : > { %v776_v31 = vpop.f32.mrb[13].mxu0  ;;  %v785_v34 = vadd.f32 %v1372_v28, %v1237_v18 }
 0x2eb   : > { %v1373_v33 = vpop.f32.mrb[14].mxu0  ;;  %1390 = vmatprep.mubr.bf16.mxu0 %v795_v29  ;;  %v777_v37 = vadd.f32 %v1237_v18, %v776_v31 }
 0x2ec   : > { %v788_v35 = vadd.f32 %v1373_v33, %v1237_v18  ;;  %v779_v36 = vpop.f32.mrb[15].mxu0  ;;  %1391 = vmatmul.mubr.bf16.vlgmr.msra.gmra.mrb[16].mxu0 %v796_v30 }
 0x2ed   : > { %v780_v38 = vadd.f32 %v1237_v18, %v779_v36 }
 0x2ee   : > { %v794_v39 = vpack.c.bf16 %v788_v35, %v785_v34 }
 0x2ef   : > { %v793_v40 = vpack.c.bf16 %v780_v38, %v777_v37 }
 0x2f0   : > { %v798_v42 = vmax.bf16 %v1711_v32, %v794_v39 }
 0x2f1   : > { %v797_v41 = vmax.bf16 %v1711_v32, %v793_v40 }
 0x2f3   : > { %1394 = vmatprep.mubr.bf16.mxu1 %v797_v41 }
 0x2f4   : > { %1395 = vmatmul.mubr.bf16.vlgmr.msra.gmra.mrb[8].mxu1 %v798_v42 }
 0x3bf   : > { %v1392_v44 = vpop.f32.mrb[16].mxu0 }
 0x3c0   : > { %v913_v45 = vadd.f32 %v1392_v44, %v1246_v43  ;;  %v904_v46 = vpop.f32.mrb[17].mxu0 }
 0x3c1   : > { %v905_v47 = vadd.f32 %v1246_v43, %v904_v46  ;;  %v1393_v48 = vpop.f32.mrb[18].mxu0 }
 0x3c2   : > { %937 = vst [vmem:[%s1927_s26 + $0x10] sm:$0xff] %v913_v45  ;;  %v916_v32 = vadd.f32 %v1393_v48, %v1246_v43  ;;  %v907_v49 = vpop.f32.mrb[19].mxu0 }
 0x3c3   : > { %935 = vst [vmem:[%s1927_s26] sm:$0xff] %v905_v47  ;;  %v908_v50 = vadd.f32 %v1246_v43, %v907_v49 }
 0x3c4   : > { %938 = vst [vmem:[%s1927_s26 + $0x18] sm:$0xff] %v916_v32 }
 0x3c5   : > { %936 = vst [vmem:[%s1927_s26 + $0x8] sm:$0xff] %v908_v50 }
 0x3c7   : > { %v1396_v51 = vpop.f32.mrb[8].mxu1  ;;  %949 = sbr.rel (!%p2018_p12) target bundleno = 1023 (0x3ff), region = 68 }
 0x3c8   : > { %v929_v52 = vadd.f32 %v1396_v51, %v1246_v43  ;;  %v920_v53 = vpop.f32.mrb[9].mxu1 }
 0x3c9   : > { %v921_v54 = vadd.f32 %v1246_v43, %v920_v53  ;;  %v1397_v55 = vpop.f32.mrb[10].mxu1 }
 0x3ca   : > { %941 = vst [vmem:[%s1927_s26 + $0x30] sm:$0xff] %v929_v52  ;;  %v932_v56 = vadd.f32 %v1397_v55, %v1246_v43  ;;  %v923_v57 = vpop.f32.mrb[11].mxu1 }
 0x3cb   : > { %939 = vst [vmem:[%s1927_s26 + $0x20] sm:$0xff] %v921_v54  ;;  %v924_v58 = vadd.f32 %v1246_v43, %v923_v57 }
 0x3cc   : > { %942 = vst [vmem:[%s1927_s26 + $0x38] sm:$0xff] %v932_v56 }
 0x3cd   : > { %940 = vst [vmem:[%s1927_s26 + $0x28] sm:$0xff] %v924_v58 }
 0x3ce   : > { %s2026_s30 = smov (!%p952_p13, %s951_s30), 8 }
 0x3cf   : > { %s1257_s14 = sshll.u32 %s2026_s30, 7 }
 0x3d0   : > { %p1260_p0 = scmp.eq.s32.totalorder %s1257_s14, 0 }
 0x3d1   : > { %s1950_s20 = sshrl.u32 (!%p1260_p0), %s2026_s30, 3 }
 0x3d2   : > { %960 = sbr.rel (%p1260_p0) target bundleno = 1023 (0x3ff), region = 72  ;;  %p1261_p1 = scmp.le.s32.totalorder (!%p1260_p0), %s1950_s20, 0 }
 0x3d9   : > { %1146 = sbr.rel (%p1261_p1) target bundleno = 1002 (0x3ea), region = 149  ;;  %s2019_s12 = smov (!%p1261_p1), %s1944_s11 }
 0x3da   : > { %s2020_s17 = smov (!%p1261_p1), %s1927_s26  ;;  %s1959_s21 = smov (!%p1261_p1), 0  }
 0x3db   : > { %s1961_s22 = smov (!%p1261_p1), 0  }
 0x3e0 LB: >> { %v1036_v59 = vld [vmem:[%s1681_s17] sm:$0xff]  ;;  %v1038_v60 = vld [vmem:[%s1681_s17 + $0x8] sm:$0xff]  ;;  %v1040_v61 = vld [vmem:[%s1681_s17 + $0x10] sm:$0xff]  ;;  %s1052_s24 = sadd.s32 1, %s1685_s21  ;;  %s1030_s22 = sadd.s32 1, %s1689_s22   ;;  %s1689_s22 = sphi %s1961_s22, %s1030_s22   ;;  %s1685_s21 = sphi %s1959_s21, %s2021_s21   ;;  %s1681_s17 = sphi %s2020_s17, %s1057_s17   ;;  %s1677_s12 = sphi %s2019_s12, %s1058_s12  }
 0x3e1   : >> { %1037 = vst [vmem:[%s1677_s12] sm:$0xff] %v1036_v59  ;;  %1039 = vst [vmem:[%s1677_s12 + $0x8] sm:$0xff] %v1038_v60  ;;  %v1042_v62 = vld [vmem:[%s1681_s17 + $0x18] sm:$0xff]  ;;  %v1044_v63 = vld [vmem:[%s1681_s17 + $0x20] sm:$0xff]  ;;  %p1053_p2 = scmp.ge.s32.totalorder %s1052_s24, %s1950_s20  ;;  %p1029_p3 = scmp.ge.s32.totalorder %s1030_s22, %s1950_s20 }
 0x3e2   : >> { %1041 = vst [vmem:[%s1677_s12 + $0x10] sm:$0xff] %v1040_v61  ;;  %v1046_v0 = vld [vmem:[%s1681_s17 + $0x28] sm:$0xff]  ;;  %1043 = vst [vmem:[%s1677_s12 + $0x18] sm:$0xff] %v1042_v62  ;;  %v1048_v1 = vld [vmem:[%s1681_s17 + $0x30] sm:$0xff] }
 0x3e3   : >> { %1045 = vst [vmem:[%s1677_s12 + $0x20] sm:$0xff] %v1044_v63  ;;  %1047 = vst [vmem:[%s1677_s12 + $0x28] sm:$0xff] %v1046_v0  ;;  %v1050_v2 = vld [vmem:[%s1681_s17 + $0x38] sm:$0xff]  ;;  %s2028_s24 = smov (%p1053_p2, %s1052_s24), 0  ;;  %1032 = sbr.rel (!%p1029_p3) target bundleno = 992 (0x3e0), region = 155 }
 0x3e4   : >> { %1049 = vst [vmem:[%s1677_s12 + $0x30] sm:$0xff] %v1048_v1  ;;  %1051 = vst [vmem:[%s1677_s12 + $0x38] sm:$0xff] %v1050_v2  ;;  %s1262_s18 = sshll.u32 %s2028_s24, 6  ;;  %s2021_s21 = smov %s2028_s24 }
 0x3e5   : >> { %s1057_s17 = scalar_lea.vmem %s1927_s26, %s1262_s18 [#allocation6]   ;;  %s1058_s12 = scalar_lea.vmem %s1944_s11, %s1262_s18  }
 0x3ea PF: > { %s1980_s23 = sand.u32 7, %s2026_s30   ;;  %s1273_s15 = sshll.u32 %s1950_s20, 6 }
 0x3eb   : > { %s1063_s19 = scalar_lea.vmem %s1927_s26, %s1273_s15 [#allocation6]   ;;  %s1065_s25 = scalar_lea.vmem %s1944_s11, %s1273_s15  }
 0x3ec   : > { %p1267_p5 = scmp.le.s32.totalorder %s1980_s23, 0 }
 0x3ed   : > { %s1691_s27 = smov (!%p1267_p5), %s1065_s25   ;;  %s1695_s28 = smov (!%p1267_p5), %s1063_s19  }
 0x3ee   : > { %1160 = sbr.rel (%p1267_p5) target bundleno = 1023 (0x3ff), region = 160  ;;  %s1699_s29 = smov (!%p1267_p5), 0  }
 0x3ef   : > { %s1703_s14 = smov (!%p1267_p5), 0  }
 0x3f5 LB: >> { %v1075_v3 = vld [vmem:[%s1697_s28] sm:$0xff]  ;;  %s1077_s30 = sadd.s32 1, %s1701_s29  ;;  %s1069_s14 = sadd.s32 1, %s1705_s14   ;;  %s1705_s14 = sphi %s1703_s14, %s1069_s14   ;;  %s1701_s29 = sphi %s1699_s29, %s1700_s29   ;;  %s1697_s28 = sphi %s1695_s28, %s1082_s28   ;;  %s1693_s27 = sphi %s1691_s27, %s1083_s27  }
 0x3f6   : >> { %1076 = vst [vmem:[%s1693_s27] sm:$0xff] %v1075_v3  ;;  %p1078_p8 = scmp.ge.s32.totalorder %s1077_s30, %s1980_s23  ;;  %p1068_p10 = scmp.ge.s32.totalorder %s1069_s14, %s1980_s23 }
 0x3f8   : >> { %s2030_s30 = smov (%p1078_p8, %s1077_s30), 0  ;;  %1071 = sbr.rel (!%p1068_p10) target bundleno = 1013 (0x3f5), region = 166 }
 0x3f9   : >> { %s1268_s26 = sshll.u32 %s2030_s30, 3  ;;  %s1700_s29 = smov %s2030_s30  }
 0x3fa   : >> { %s1082_s28 = scalar_lea.vmem %s1063_s19, %s1268_s26 [#allocation6]   ;;  %s1083_s27 = scalar_lea.vmem %s1065_s25, %s1268_s26  }
 0x3ff PF: > { %p18_p4 = scmp.ge.s32.totalorder %s1777_s13, 4   ;;  %s2022_s30 = smov %s1669_s10 }
 0x400   : > { %s2023_s10 = smov %s1785_s16  ;;  %s2024_s11 = smov %s1777_s13 }
 0x401   :  { %20 = sbr.rel (!%p18_p4) target bundleno = 3 (0x3), region = 177 }
 0x408   :  { %1099 = vsyncpa [#allocation3], 1 }
 0x409   :  { %1101 = vsyncpa [#allocation3 + $0x1], 1 }
 0x40a   :  { %1102 = vsyncpa [#allocation5], 1 }

// kernel: mlp_forward.1
= control target key start
LH: loop header
LB: loop body
LE: loop exit
PB: predicated region body
PF: predicated region fallthrough
CT: control target
= control target key end

     0   :  { %14 = vsyncpa [#allocation3], 0  ;;  %s1998_s0 = inlined_call_operand.vmem [shape: bf16[100,8], index: 0, kind: input, shape index: {}]   ;;  %s1999_s1 = inlined_call_operand.vmem [shape: bf16[8,128], index: 1, kind: input, shape index: {}]   ;;  %s2000_s2 = inlined_call_operand.vmem [shape: f32[1,128], index: 2, kind: input, shape index: {}]   ;;  %s2001_s3 = inlined_call_operand.vmem [shape: bf16[128,128], index: 3, kind: input, shape index: {}]   ;;  %s2002_s4 = inlined_call_operand.vmem [shape: f32[1,128], index: 4, kind: input, shape index: {}]   ;;  %s2003_s5 = inlined_call_operand.hbm [shape: bf16[128,128], index: 5, kind: input, shape index: {}]   ;;  %s2004_s6 = inlined_call_operand.vmem [shape: f32[1,128], index: 6, kind: input, shape index: {}]   ;;  %s2005_s7 = inlined_call_operand.hbm [shape: bf16[128,128], index: 7, kind: input, shape index: {}]   ;;  %s2006_s8 = inlined_call_operand.vmem [shape: f32[1,128], index: 8, kind: input, shape index: {}]   ;;  %s2007_s9 = inlined_call_operand.vmem [shape: f32[100,128], index: 9, kind: output, shape index: {}]  }
   0x1   :  { %15 = vsyncpa [#allocation5], 0  ;;  %s1762_s30 = smov 0   ;;  %s1764_s10 = smov 0  }
   0x2   :  { %s1766_s11 = smov 0  }
   0x3 LB: > { %s1775_s12 = sadd.s32 4294967295, %s1673_s11   ;;  %s1777_s13 = sadd.s32 1, %s1673_s11   ;;  %s1673_s11 = sphi %s1766_s11, %s2024_s11   ;;  %s1669_s10 = sphi %s1764_s10, %s2023_s10   ;;  %s1665_s30 = sphi %s1762_s30, %s2022_s30  }
   0x4   : > { %s219_s14 = ssub.s32 %s1673_s11, %s1777_s13  ;;  %s222_s15 = sadd.s32 1, %s1669_s10 }
   0x5   : > { %p220_p0 = scmp.eq.s32.totalorder %s219_s14, 0  ;;  %p232_p1 = scmp.ne.s32.totalorder %s1669_s10, %s1665_s30 }
   0x6   : > { %p233_p2 = scmp.eq.s32.totalorder %s1775_s12, 1  ;;  %p1209_p3 = scmp.ge.s32.totalorder %s1673_s11, 1 }
   0x7   : > { %s1785_s16 = scalar_select %p220_p0, %s1669_s10, %s222_s15  }
   0x8   : > { %p1787_p4 = por %p233_p2, %p232_p1  ;;  %p246_p5 = scmp.lt.s32.totalorder %s1673_s11, 3 }
   0x9   : > { %p2008_p6 = scmp.eq.s32.totalorder %s1775_s12, 0  ;;  %s1707_s19 = smov [#allocation2]  }
   0xa   : > { %s2010_s17 = scalar_select %p1787_p4, 1, 0 }
   0xb   : > { %p1792_p7 = pnand %p1209_p3, %p246_p5  ;;  %s270_s20 = sshll.u32 %s1707_s19, 4  ;;  %s271_s20 = int_to_ptr.vmem [resolvable:$true] %s270_s20 }
   0xc   : > { %s1708_s22 = smov [#allocation4]   ;;  %s1555_s26 = scalar_lea.hbm %s2003_s5, 1024 }
   0xd   : > { %s2011_s18 = scalar_select %p1792_p7, 1, 0 }
   0xe   : > { %p1423_p8 = pneg %p1792_p7  ;;  %s286_s23 = sshll.u32 %s1708_s22, 4  ;;  %s1804_s23 = int_to_ptr.vmem [resolvable:$true] %s286_s23 }
   0xf   : > { %p1556_p10 = scmp.ne.s32.totalorder %s2003_s5, %s1555_s26  ;;  %p1562_p0 = scmp.lt.u32.totalorder %s1555_s26, %s2003_s5 }
  0x10   : > { %p1800_p9 = pnand %p2008_p6, %p1423_p8 }
  0x12   : > { %p1557_p11 = pneg %p1800_p9 }
  0x14   : > { %p1558_p12 = pnand %p1557_p11, %p1556_p10 }
  0x16   : > { %p1559_p13 = pneg %p1558_p12 }
  0x18   : > { %p1564_p1 = pnand %p1562_p0, %p1559_p13 }
  0x1a   : > { %1567 = shalt.err (!%p1564_p1)
}
  0x1b   : > { %s1568_s14 = scalar_lea.vmem %s271_s20, 1024  ;;  %p1576_p8 = scmp.lt.s32.totalorder %s271_s20, %s271_s20 }
  0x1c   : > { %p1569_p2 = scmp.ne.s32.totalorder %s271_s20, %s1568_s14  ;;  %p1577_p6 = scmp.lt.s32.totalorder %s1568_s14, %s1568_s14 }
  0x1e   : > { %p1571_p3 = pnand %p1569_p2, %p1557_p11  ;;  %p1578_p4 = por %p1577_p6, %p1576_p8 }
  0x20   : > { %p1572_p5 = pneg %p1571_p3 }
  0x22   : > { %p1579_p7 = pnand %p1578_p4, %p1572_p5 }
  0x24   : > { %1582 = shalt.err (!%p1579_p7)
}
  0x25   : > { %s1709_s15 = smov 64   ;;  %s1710_s19 = smov 4  }
  0x26   : > { %1426 = dma.hbm_to_vmem [thread:$0]  (!%p1800_p9), %s2003_s5, 1024, %s271_s20, [#allocation3], %s1709_s15, %s1709_s15, %s1710_s19  }
  0x27   : > { %s1583_s27 = scalar_lea.hbm %s2005_s7, 1024 }
  0x28   : > { %p1584_p10 = scmp.ne.s32.totalorder %s2005_s7, %s1583_s27  ;;  %p1590_p7 = scmp.lt.u32.totalorder %s1583_s27, %s2005_s7 }
  0x2a   : > { %p1586_p4 = pnand %p1584_p10, %p1557_p11 }
  0x2c   : > { %p1587_p6 = pneg %p1586_p4 }
  0x2e   : > { %p1592_p12 = pnand %p1590_p7, %p1587_p6 }
  0x30   : > { %1595 = shalt.err (!%p1592_p12)
}
  0x31   : > { %s1596_s20 = scalar_lea.vmem %s1804_s23, 1024  ;;  %p1604_p2 = scmp.lt.s32.totalorder %s1804_s23, %s1804_s23 }
  0x32   : > { %p1597_p13 = scmp.ne.s32.totalorder %s1804_s23, %s1596_s20  ;;  %p1605_p3 = scmp.lt.s32.totalorder %s1596_s20, %s1596_s20 }
  0x34   : > { %p1599_p0 = pnand %p1597_p13, %p1557_p11  ;;  %p1606_p5 = por %p1605_p3, %p1604_p2 }
  0x36   : > { %p1600_p1 = pneg %p1599_p0 }
  0x38   : > { %p1607_p8 = pnand %p1606_p5, %p1600_p1 }
  0x3a   : > { %1610 = shalt.err (!%p1607_p8)
}
  0x3b   : > { %1429 = dma.hbm_to_vmem [thread:$0]  (!%p1800_p9), %s2005_s7, 1024, %s1804_s23, [#allocation5], %s1709_s15, %s1709_s15, %s1710_s19  }
  0x3c   : > { %p2013_p10 = scmp.ne.s32.totalorder %s2011_s18, 0 }
  0x3d   : > { %p2014_p4 = scmp.eq.s32.totalorder (!%p2013_p10), %s1775_s12, 0 }
  0x3e   : > { %322 = sbr.rel (%p2013_p10) target bundleno = 1023 (0x3ff), region = 56 }
  0x45   : > { %1656 = dma.done.wait (%p2014_p4), [#allocation3], 1024   ;;  %p2015_p11 = pmov %p2014_p4 }
  0x46   : > { %p2016_p6 = pmov %p2014_p4 }
  0x47   : > { %1658 = vsyncadd (%p2015_p11), [#allocation3], 4294966272 }
  0x48   : > { %1660 = dma.done.wait (%p2016_p6), [#allocation5], 1024   ;;  %p2017_p7 = pmov %p2014_p4 }
  0x49   : > { %s1864_s21 = sshll.u32 %s1775_s12, 3  ;;  %vm434_vm0 = vcmask 1043456   ;;  %vm421_vm1 = vcmask 64512   ;;  %v393_v0 = vld [vmem:[%s1999_s1] sm:$0xf]  ;;  %v1532_v6 = vld [vmem:[%s2001_s3 + $0x8] sm:$0xff]  }
  0x4a   : > { %1662 = vsyncadd (%p2017_p7), [#allocation5], 4294966272  ;;  %p370_p9 = scmp.lt.s32.totalorder %s1864_s21, 12  ;;  %1414 = vmatprep.subr.msk.bf16.mxu0 %vm434_vm0, %v393_v0  ;;  %v436_v1 = vsel %vm434_vm0, %v393_v0, 0  ;;  %v1531_v5 = vld [vmem:[%s2001_s3] sm:$0xff]   ;;  %v1533_v8 = vld [vmem:[%s2001_s3 + $0x10] sm:$0xff]  }
  0x4b   : > { %1317 = vmatpush3.bf16.msra.mxu0 %v436_v1  ;;  %1326 = vmatprep.subr.bf16.mxu1 %v1531_v5  ;;  %v1534_v9 = vld [vmem:[%s2001_s3 + $0x18] sm:$0xff]   ;;  %v1535_v10 = vld [vmem:[%s2001_s3 + $0x20] sm:$0xff]   ;;  %v1536_v11 = vld [vmem:[%s2001_s3 + $0x28] sm:$0xff]   ;;  %v1711_v32 = vmov 0   ;;  %p2018_p12 = scmp.ne.s32.totalorder %s2010_s17, 0 }
  0x4c   : > { %s371_s18 = scalar_select %p370_p9, %s1864_s21, 12  ;;  %1327 = vmatpush3.bf16.msra.mxu1 %v1531_v5  ;;  %v1537_v12 = vld [vmem:[%s2001_s3 + $0x30] sm:$0xff]   ;;  %v1538_v13 = vld [vmem:[%s2001_s3 + $0x38] sm:$0xff]   ;;  %v1539_v14 = vld [vmem:[#allocation2] sm:$0xff]  }
  0x4d   : > { %1328 = vmatprep.subr.bf16.mxu1 %v1532_v6  ;;  %v1540_v15 = vld [vmem:[#allocation2 + $0x8] sm:$0xff]   ;;  %1350 = vmatprep.subr.bf16.mxu0 %v1539_v14  ;;  %v1541_v16 = vld [vmem:[#allocation2 + $0x10] sm:$0xff]   ;;  %v1542_v17 = vld [vmem:[#allocation2 + $0x18] sm:$0xff]   ;;  %s1272_s27 = sshll.u32 (%p2018_p12), %s1775_s12, 6 }
  0x4e   : > { %s1218_s23 = sshll.u32 %s371_s18, 2  ;;  %v1543_v18 = vld [vmem:[#allocation2 + $0x20] sm:$0xff]   ;;  %v1544_v19 = vld [vmem:[#allocation2 + $0x28] sm:$0xff]   ;;  %v1545_v46 = vld [vmem:[#allocation2 + $0x30] sm:$0xff]   ;;  %s1944_s11 = scalar_lea.vmem (%p2018_p12), %s2007_s9, %s1272_s27  }
  0x4f   : > { %s373_s25 = scalar_lea.vmem %s1998_s0, %s1218_s23  ;;  %v1219_v21 = vld [vmem:[%s2000_s2] ss:$0 sm:$0xff]  ;;  %v1546_v47 = vld [vmem:[#allocation2 + $0x38] sm:$0xff]   ;;  %v1548_v49 = vld [vmem:[#allocation4 + $0x8] sm:$0xff]   ;;  %s362_s23 = sand.u32 1, %s1665_s30  }
  0x50   : > { %v1527_v2 = vld [vmem:[%s373_s25] sm:$0xff]   ;;  %v1528_v3 = vld [vmem:[%s373_s25 + $0x8] sm:$0xff]   ;;  %v1529_v4 = vld [vmem:[%s373_s25 + $0x10] sm:$0xff]   ;;  %1329 = vmatpush3.bf16.msra.mxu1 %v1532_v6  ;;  %s1216_s15 = sshll.u32 %s362_s23, 6  ;;  %s951_s30 = ssub.s32 (%p2018_p12), 13, %s1864_s21 }
  0x51   : > { %1318 = vmatprep.mubr.msk.bf16.mxu0 %vm421_vm1, %v1527_v2  ;;  %v1530_v7 = vld [vmem:[%s373_s25 + $0x18] sm:$0xff]   ;;  %1330 = vmatprep.subr.bf16.mxu1 %v1533_v8  ;;  %v1547_v48 = vld [vmem:[#allocation4] sm:$0xff]   ;;  %v1549_v50 = vld [vmem:[#allocation4 + $0x10] sm:$0xff]   ;;  %s1927_s26 = scalar_lea.vmem [#allocation6], %s1216_s15   ;;  %p952_p13 = scmp.lt.s32.totalorder (%p2018_p12), %s951_s30, 8 }
  0x52   : > { %1319 = vmatmul.mubr.msk.bf16.vlgmr.msra.gmra.mrb[0].mxu0 %vm421_vm1, %v1528_v3  ;;  %v1550_v51 = vld [vmem:[#allocation4 + $0x18] sm:$0xff]   ;;  %v1551_v52 = vld [vmem:[#allocation4 + $0x20] sm:$0xff]   ;;  %v1552_v53 = vld [vmem:[#allocation4 + $0x28] sm:$0xff]  }
  0x53   : > { %1322 = vmatprep.mubr.msk.bf16.mxu0 %vm421_vm1, %v1529_v4  ;;  %1351 = vmatpush3.bf16.msra.mxu0 %v1539_v14  ;;  %v1228_v55 = vld [vmem:[%s2002_s4] ss:$0 sm:$0xff] }
  0x54   : > { %1331 = vmatpush3.bf16.msra.mxu1 %v1533_v8  ;;  %1352 = vmatprep.subr.bf16.mxu0 %v1540_v15 }
  0x55   : > { %1332 = vmatprep.subr.bf16.mxu1 %v1534_v9 }
  0x57   : > { %1353 = vmatpush3.bf16.msra.mxu0 %v1540_v15  ;;  %v1553_v15 = vld [vmem:[#allocation4 + $0x30] sm:$0xff]  }
  0x58   : > { %1333 = vmatpush3.bf16.msra.mxu1 %v1534_v9  ;;  %1354 = vmatprep.subr.bf16.mxu0 %v1541_v16 }
  0x59   : > { %1334 = vmatprep.subr.bf16.mxu1 %v1535_v10 }
  0x5a   : > { %1323 = vmatmul.mubr.msk.bf16.gmra.mrb[4].mxu0 %vm421_vm1, %v1530_v7 }
  0x5b   : > { %1355 = vmatpush3.bf16.msra.mxu0 %v1541_v16  ;;  %v1554_v16 = vld [vmem:[#allocation4 + $0x38] sm:$0xff]  }
  0x5c   : > { %1335 = vmatpush3.bf16.msra.mxu1 %v1535_v10  ;;  %1356 = vmatprep.subr.bf16.mxu0 %v1542_v17 }
  0x5d   : > { %1336 = vmatprep.subr.bf16.mxu1 %v1536_v11 }
  0x5f   : > { %1357 = vmatpush3.bf16.msra.mxu0 %v1542_v17 }
  0x60   : > { %1337 = vmatpush3.bf16.msra.mxu1 %v1536_v11  ;;  %1358 = vmatprep.subr.bf16.mxu0 %v1543_v18 }
  0x61   : > { %1338 = vmatprep.subr.bf16.mxu1 %v1537_v12 }
  0x63   : > { %1359 = vmatpush3.bf16.msra.mxu0 %v1543_v18  ;;  %v1237_v18 = vld [vmem:[%s2004_s6] ss:$0 sm:$0xff] }
  0x64   : > { %1339 = vmatpush3.bf16.msra.mxu1 %v1537_v12  ;;  %1360 = vmatprep.subr.bf16.mxu0 %v1544_v19 }
  0x65   : > { %1340 = vmatprep.subr.bf16.mxu1 %v1538_v13 }
  0x67   : > { %1361 = vmatpush3.bf16.msra.mxu0 %v1544_v19 }
  0x68   : > { %1341 = vmatpush3.bf16.msra.mxu1 %v1538_v13  ;;  %1362 = vmatprep.subr.bf16.mxu0 %v1545_v46 }
  0x69   : > { %1398 = vmatprep.subr.bf16.mxu1 %v1547_v48 }
  0x6b   : > { %1363 = vmatpush3.bf16.msra.mxu0 %v1545_v46 }
  0x6c   : > { %1364 = vmatprep.subr.bf16.mxu0 %v1546_v47 }
  0x6f   : > { %1365 = vmatpush3.bf16.msra.mxu0 %v1546_v47 }
  0x70   : > { %1374 = vmatprep.subr.bf16.mxu0 %v1547_v48 }
 0x125   : > { %v1320_v20 = vpop.f32.mrb[0].mxu0 }
 0x126   : > { %v472_v22 = vpop.f32.mrb[1].mxu0  ;;  %v481_v24 = vadd.f32 %v1320_v20, %v1219_v21 }
 0x127   : > { %v1321_v23 = vpop.f32.mrb[2].mxu0  ;;  %v473_v27 = vadd.f32 %v1219_v21, %v472_v22 }
 0x128   : > { %v484_v25 = vadd.f32 %v1321_v23, %v1219_v21  ;;  %v475_v26 = vpop.f32.mrb[3].mxu0 }
 0x129   : > { %v476_v28 = vadd.f32 %v1219_v21, %v475_v26 }
 0x12a   : > { %v504_v29 = vpack.c.bf16 %v484_v25, %v481_v24 }
 0x12b   : > { %v503_v30 = vpack.c.bf16 %v476_v28, %v473_v27 }
 0x12c   : > { %v508_v35 = vmax.bf16 %v1711_v32, %v504_v29 }
 0x12d   : > { %v1324_v31 = vpop.f32.mrb[4].mxu0  ;;  %v507_v33 = vmax.bf16 %v1711_v32, %v503_v30 }
 0x12e   : > { %v488_v34 = vpop.f32.mrb[5].mxu0  ;;  %v497_v37 = vadd.f32 %v1324_v31, %v1219_v21 }
 0x12f   : > { %v1325_v36 = vpop.f32.mrb[6].mxu0  ;;  %1342 = vmatprep.mubr.bf16.mxu1 %v507_v33  ;;  %v489_v40 = vadd.f32 %v1219_v21, %v488_v34 }
 0x130   : > { %v500_v38 = vadd.f32 %v1325_v36, %v1219_v21  ;;  %v491_v39 = vpop.f32.mrb[7].mxu0  ;;  %1343 = vmatmul.mubr.bf16.vlgmr.msra.gmra.mrb[0].mxu1 %v508_v35 }
 0x131   : > { %v492_v41 = vadd.f32 %v1219_v21, %v491_v39  ;;  %1406 = vmatpush3.bf16.msra.mxu1 %v1547_v48 }
 0x132   : > { %v506_v42 = vpack.c.bf16 %v500_v38, %v497_v37  ;;  %1399 = vmatprep.subr.bf16.mxu1 %v1548_v49 }
 0x133   : > { %v505_v43 = vpack.c.bf16 %v492_v41, %v489_v40 }
 0x134   : > { %v510_v45 = vmax.bf16 %v1711_v32, %v506_v42 }
 0x135   : > { %v509_v44 = vmax.bf16 %v1711_v32, %v505_v43  ;;  %1407 = vmatpush3.bf16.msra.mxu1 %v1548_v49  ;;  %v1246_v43 = vld [vmem:[%s2006_s8] ss:$0 sm:$0xff] }
 0x136   : > { %1400 = vmatprep.subr.bf16.mxu1 %v1549_v50 }
 0x137   : > { %1346 = vmatprep.mubr.bf16.mxu1 %v509_v44 }
 0x138   : > { %1347 = vmatmul.mubr.bf16.gmra.mrb[4].mxu1 %v510_v45 }
 0x139   : > { %1408 = vmatpush3.bf16.msra.mxu1 %v1549_v50 }
 0x13a   : > { %1401 = vmatprep.subr.bf16.mxu1 %v1550_v51 }
 0x13d   : > { %1409 = vmatpush3.bf16.msra.mxu1 %v1550_v51 }
 0x13e   : > { %1402 = vmatprep.subr.bf16.mxu1 %v1551_v52 }
 0x141   : > { %1410 = vmatpush3.bf16.msra.mxu1 %v1551_v52 }
 0x142   : > { %1403 = vmatprep.subr.bf16.mxu1 %v1552_v53 }
 0x145   : > { %1411 = vmatpush3.bf16.msra.mxu1 %v1552_v53 }
 0x146   : > { %1404 = vmatprep.subr.bf16.mxu1 %v1553_v15 }
 0x149   : > { %1412 = vmatpush3.bf16.msra.mxu1 %v1553_v15 }
 0x14a   : > { %1405 = vmatprep.subr.bf16.mxu1 %v1554_v16 }
 0x14d   : > { %1413 = vmatpush3.bf16.msra.mxu1 %v1554_v16 }
 0x203   : > { %v1344_v54 = vpop.f32.mrb[0].mxu1 }
 0x204   : > { %v616_v56 = vpop.f32.mrb[1].mxu1  ;;  %v625_v58 = vadd.f32 %v1344_v54, %v1228_v55 }
 0x205   : > { %v1345_v57 = vpop.f32.mrb[2].mxu1  ;;  %v617_v61 = vadd.f32 %v1228_v55, %v616_v56 }
 0x206   : > { %v628_v59 = vadd.f32 %v1345_v57, %v1228_v55  ;;  %v619_v60 = vpop.f32.mrb[3].mxu1 }
 0x207   : > { %v620_v62 = vadd.f32 %v1228_v55, %v619_v60 }
 0x208   : > { %v648_v63 = vpack.c.bf16 %v628_v59, %v625_v58 }
 0x209   : > { %v647_v0 = vpack.c.bf16 %v620_v62, %v617_v61 }
 0x20a   : > { %v652_v3 = vmax.bf16 %v1711_v32, %v648_v63 }
 0x20b   : > { %v1348_v1 = vpop.f32.mrb[4].mxu1  ;;  %v651_v2 = vmax.bf16 %v1711_v32, %v647_v0 }
 0x20c   : > { %v632_v4 = vpop.f32.mrb[5].mxu1  ;;  %v641_v6 = vadd.f32 %v1348_v1, %v1228_v55 }
 0x20d   : > { %v1349_v5 = vpop.f32.mrb[6].mxu1  ;;  %1366 = vmatprep.mubr.bf16.mxu0 %v651_v2  ;;  %v633_v9 = vadd.f32 %v1228_v55, %v632_v4 }
 0x20e   : > { %v644_v7 = vadd.f32 %v1349_v5, %v1228_v55  ;;  %v635_v8 = vpop.f32.mrb[7].mxu1  ;;  %1367 = vmatmul.mubr.bf16.vlgmr.msra.gmra.mrb[8].mxu0 %v652_v3 }
 0x20f   : > { %v636_v10 = vadd.f32 %v1228_v55, %v635_v8  ;;  %1375 = vmatpush3.bf16.msra.mxu0 %v1547_v48 }
 0x210   : > { %v650_v11 = vpack.c.bf16 %v644_v7, %v641_v6  ;;  %1376 = vmatprep.subr.bf16.mxu0 %v1548_v49 }
 0x211   : > { %v649_v12 = vpack.c.bf16 %v636_v10, %v633_v9 }
 0x212   : > { %v654_v14 = vmax.bf16 %v1711_v32, %v650_v11 }
 0x213   : > { %v653_v13 = vmax.bf16 %v1711_v32, %v649_v12  ;;  %1377 = vmatpush3.bf16.msra.mxu0 %v1548_v49 }
 0x214   : > { %1378 = vmatprep.subr.bf16.mxu0 %v1549_v50 }
 0x215   : > { %1370 = vmatprep.mubr.bf16.mxu0 %v653_v13 }
 0x216   : > { %1371 = vmatmul.mubr.bf16.gmra.mrb[12].mxu0 %v654_v14 }
 0x217   : > { %1379 = vmatpush3.bf16.msra.mxu0 %v1549_v50 }
 0x218   : > { %1380 = vmatprep.subr.bf16.mxu0 %v1550_v51 }
 0x21b   : > { %1381 = vmatpush3.bf16.msra.mxu0 %v1550_v51 }
 0x21c   : > { %1382 = vmatprep.subr.bf16.mxu0 %v1551_v52 }
 0x21f   : > { %1383 = vmatpush3.bf16.msra.mxu0 %v1551_v52 }
 0x220   : > { %1384 = vmatprep.subr.bf16.mxu0 %v1552_v53 }
 0x223   : > { %1385 = vmatpush3.bf16.msra.mxu0 %v1552_v53 }
 0x224   : > { %1386 = vmatprep.subr.bf16.mxu0 %v1553_v15 }
 0x227   : > { %1387 = vmatpush3.bf16.msra.mxu0 %v1553_v15 }
 0x228   : > { %1388 = vmatprep.subr.bf16.mxu0 %v1554_v16 }
 0x22b   : > { %1389 = vmatpush3.bf16.msra.mxu0 %v1554_v16 }
 0x2e1   : > { %v1368_v17 = vpop.f32.mrb[8].mxu0 }
 0x2e2   : > { %v760_v19 = vpop.f32.mrb[9].mxu0  ;;  %v769_v21 = vadd.f32 %v1368_v17, %v1237_v18 }
 0x2e3   : > { %v1369_v20 = vpop.f32.mrb[10].mxu0  ;;  %v761_v24 = vadd.f32 %v1237_v18, %v760_v19 }
 0x2e4   : > { %v772_v22 = vadd.f32 %v1369_v20, %v1237_v18  ;;  %v763_v23 = vpop.f32.mrb[11].mxu0 }
 0x2e5   : > { %v764_v25 = vadd.f32 %v1237_v18, %v763_v23 }
 0x2e6   : > { %v792_v26 = vpack.c.bf16 %v772_v22, %v769_v21 }
 0x2e7   : > { %v791_v27 = vpack.c.bf16 %v764_v25, %v761_v24 }
 0x2e8   : > { %v796_v30 = vmax.bf16 %v1711_v32, %v792_v26 }
 0x2e9   : > { %v1372_v28 = vpop.f32.mrb[12].mxu0  ;;  %v795_v29 = vmax.bf16 %v1711_v32, %v791_v27 }
 0x2ea   : > { %v776_v31 = vpop.f32.mrb[13].mxu0  ;;  %v785_v34 = vadd.f32 %v1372_v28, %v1237_v18 }
 0x2eb   : > { %v1373_v33 = vpop.f32.mrb[14].mxu0  ;;  %1390 = vmatprep.mubr.bf16.mxu0 %v795_v29  ;;  %v777_v37 = vadd.f32 %v1237_v18, %v776_v31 }
 0x2ec   : > { %v788_v35 = vadd.f32 %v1373_v33, %v1237_v18  ;;  %v779_v36 = vpop.f32.mrb[15].mxu0  ;;  %1391 = vmatmul.mubr.bf16.vlgmr.msra.gmra.mrb[16].mxu0 %v796_v30 }
 0x2ed   : > { %v780_v38 = vadd.f32 %v1237_v18, %v779_v36 }
 0x2ee   : > { %v794_v39 = vpack.c.bf16 %v788_v35, %v785_v34 }
 0x2ef   : > { %v793_v40 = vpack.c.bf16 %v780_v38, %v777_v37 }
 0x2f0   : > { %v798_v42 = vmax.bf16 %v1711_v32, %v794_v39 }
 0x2f1   : > { %v797_v41 = vmax.bf16 %v1711_v32, %v793_v40 }
 0x2f3   : > { %1394 = vmatprep.mubr.bf16.mxu1 %v797_v41 }
 0x2f4   : > { %1395 = vmatmul.mubr.bf16.vlgmr.msra.gmra.mrb[8].mxu1 %v798_v42 }
 0x3bf   : > { %v1392_v44 = vpop.f32.mrb[16].mxu0 }
 0x3c0   : > { %v913_v45 = vadd.f32 %v1392_v44, %v1246_v43  ;;  %v904_v46 = vpop.f32.mrb[17].mxu0 }
 0x3c1   : > { %v905_v47 = vadd.f32 %v1246_v43, %v904_v46  ;;  %v1393_v48 = vpop.f32.mrb[18].mxu0 }
 0x3c2   : > { %937 = vst [vmem:[%s1927_s26 + $0x10] sm:$0xff] %v913_v45  ;;  %v916_v32 = vadd.f32 %v1393_v48, %v1246_v43  ;;  %v907_v49 = vpop.f32.mrb[19].mxu0 }
 0x3c3   : > { %935 = vst [vmem:[%s1927_s26] sm:$0xff] %v905_v47  ;;  %v908_v50 = vadd.f32 %v1246_v43, %v907_v49 }
 0x3c4   : > { %938 = vst [vmem:[%s1927_s26 + $0x18] sm:$0xff] %v916_v32 }
 0x3c5   : > { %936 = vst [vmem:[%s1927_s26 + $0x8] sm:$0xff] %v908_v50 }
 0x3c7   : > { %v1396_v51 = vpop.f32.mrb[8].mxu1  ;;  %949 = sbr.rel (!%p2018_p12) target bundleno = 1023 (0x3ff), region = 68 }
 0x3c8   : > { %v929_v52 = vadd.f32 %v1396_v51, %v1246_v43  ;;  %v920_v53 = vpop.f32.mrb[9].mxu1 }
 0x3c9   : > { %v921_v54 = vadd.f32 %v1246_v43, %v920_v53  ;;  %v1397_v55 = vpop.f32.mrb[10].mxu1 }
 0x3ca   : > { %941 = vst [vmem:[%s1927_s26 + $0x30] sm:$0xff] %v929_v52  ;;  %v932_v56 = vadd.f32 %v1397_v55, %v1246_v43  ;;  %v923_v57 = vpop.f32.mrb[11].mxu1 }
 0x3cb   : > { %939 = vst [vmem:[%s1927_s26 + $0x20] sm:$0xff] %v921_v54  ;;  %v924_v58 = vadd.f32 %v1246_v43, %v923_v57 }
 0x3cc   : > { %942 = vst [vmem:[%s1927_s26 + $0x38] sm:$0xff] %v932_v56 }
 0x3cd   : > { %940 = vst [vmem:[%s1927_s26 + $0x28] sm:$0xff] %v924_v58 }
 0x3ce   : > { %s2026_s30 = smov (!%p952_p13, %s951_s30), 8 }
 0x3cf   : > { %s1257_s14 = sshll.u32 %s2026_s30, 7 }
 0x3d0   : > { %p1260_p0 = scmp.eq.s32.totalorder %s1257_s14, 0 }
 0x3d1   : > { %s1950_s20 = sshrl.u32 (!%p1260_p0), %s2026_s30, 3 }
 0x3d2   : > { %960 = sbr.rel (%p1260_p0) target bundleno = 1023 (0x3ff), region = 72  ;;  %p1261_p1 = scmp.le.s32.totalorder (!%p1260_p0), %s1950_s20, 0 }
 0x3d9   : > { %1146 = sbr.rel (%p1261_p1) target bundleno = 1002 (0x3ea), region = 149  ;;  %s2019_s12 = smov (!%p1261_p1), %s1944_s11 }
 0x3da   : > { %s2020_s17 = smov (!%p1261_p1), %s1927_s26  ;;  %s1959_s21 = smov (!%p1261_p1), 0  }
 0x3db   : > { %s1961_s22 = smov (!%p1261_p1), 0  }
 0x3e0 LB: >> { %v1036_v59 = vld [vmem:[%s1681_s17] sm:$0xff]  ;;  %v1038_v60 = vld [vmem:[%s1681_s17 + $0x8] sm:$0xff]  ;;  %v1040_v61 = vld [vmem:[%s1681_s17 + $0x10] sm:$0xff]  ;;  %s1052_s24 = sadd.s32 1, %s1685_s21  ;;  %s1030_s22 = sadd.s32 1, %s1689_s22   ;;  %s1689_s22 = sphi %s1961_s22, %s1030_s22   ;;  %s1685_s21 = sphi %s1959_s21, %s2021_s21   ;;  %s1681_s17 = sphi %s2020_s17, %s1057_s17   ;;  %s1677_s12 = sphi %s2019_s12, %s1058_s12  }
 0x3e1   : >> { %1037 = vst [vmem:[%s1677_s12] sm:$0xff] %v1036_v59  ;;  %1039 = vst [vmem:[%s1677_s12 + $0x8] sm:$0xff] %v1038_v60  ;;  %v1042_v62 = vld [vmem:[%s1681_s17 + $0x18] sm:$0xff]  ;;  %v1044_v63 = vld [vmem:[%s1681_s17 + $0x20] sm:$0xff]  ;;  %p1053_p2 = scmp.ge.s32.totalorder %s1052_s24, %s1950_s20  ;;  %p1029_p3 = scmp.ge.s32.totalorder %s1030_s22, %s1950_s20 }
 0x3e2   : >> { %1041 = vst [vmem:[%s1677_s12 + $0x10] sm:$0xff] %v1040_v61  ;;  %v1046_v0 = vld [vmem:[%s1681_s17 + $0x28] sm:$0xff]  ;;  %1043 = vst [vmem:[%s1677_s12 + $0x18] sm:$0xff] %v1042_v62  ;;  %v1048_v1 = vld [vmem:[%s1681_s17 + $0x30] sm:$0xff] }
 0x3e3   : >> { %1045 = vst [vmem:[%s1677_s12 + $0x20] sm:$0xff] %v1044_v63  ;;  %1047 = vst [vmem:[%s1677_s12 + $0x28] sm:$0xff] %v1046_v0  ;;  %v1050_v2 = vld [vmem:[%s1681_s17 + $0x38] sm:$0xff]  ;;  %s2028_s24 = smov (%p1053_p2, %s1052_s24), 0  ;;  %1032 = sbr.rel (!%p1029_p3) target bundleno = 992 (0x3e0), region = 155 }
 0x3e4   : >> { %1049 = vst [vmem:[%s1677_s12 + $0x30] sm:$0xff] %v1048_v1  ;;  %1051 = vst [vmem:[%s1677_s12 + $0x38] sm:$0xff] %v1050_v2  ;;  %s1262_s18 = sshll.u32 %s2028_s24, 6  ;;  %s2021_s21 = smov %s2028_s24 }
 0x3e5   : >> { %s1057_s17 = scalar_lea.vmem %s1927_s26, %s1262_s18 [#allocation6]   ;;  %s1058_s12 = scalar_lea.vmem %s1944_s11, %s1262_s18  }
 0x3ea PF: > { %s1980_s23 = sand.u32 7, %s2026_s30   ;;  %s1273_s15 = sshll.u32 %s1950_s20, 6 }
 0x3eb   : > { %s1063_s19 = scalar_lea.vmem %s1927_s26, %s1273_s15 [#allocation6]   ;;  %s1065_s25 = scalar_lea.vmem %s1944_s11, %s1273_s15  }
 0x3ec   : > { %p1267_p5 = scmp.le.s32.totalorder %s1980_s23, 0 }
 0x3ed   : > { %s1691_s27 = smov (!%p1267_p5), %s1065_s25   ;;  %s1695_s28 = smov (!%p1267_p5), %s1063_s19  }
 0x3ee   : > { %1160 = sbr.rel (%p1267_p5) target bundleno = 1023 (0x3ff), region = 160  ;;  %s1699_s29 = smov (!%p1267_p5), 0  }
 0x3ef   : > { %s1703_s14 = smov (!%p1267_p5), 0  }
 0x3f5 LB: >> { %v1075_v3 = vld [vmem:[%s1697_s28] sm:$0xff]  ;;  %s1077_s30 = sadd.s32 1, %s1701_s29  ;;  %s1069_s14 = sadd.s32 1, %s1705_s14   ;;  %s1705_s14 = sphi %s1703_s14, %s1069_s14   ;;  %s1701_s29 = sphi %s1699_s29, %s1700_s29   ;;  %s1697_s28 = sphi %s1695_s28, %s1082_s28   ;;  %s1693_s27 = sphi %s1691_s27, %s1083_s27  }
 0x3f6   : >> { %1076 = vst [vmem:[%s1693_s27] sm:$0xff] %v1075_v3  ;;  %p1078_p8 = scmp.ge.s32.totalorder %s1077_s30, %s1980_s23  ;;  %p1068_p10 = scmp.ge.s32.totalorder %s1069_s14, %s1980_s23 }
 0x3f8   : >> { %s2030_s30 = smov (%p1078_p8, %s1077_s30), 0  ;;  %1071 = sbr.rel (!%p1068_p10) target bundleno = 1013 (0x3f5), region = 166 }
 0x3f9   : >> { %s1268_s26 = sshll.u32 %s2030_s30, 3  ;;  %s1700_s29 = smov %s2030_s30  }
 0x3fa   : >> { %s1082_s28 = scalar_lea.vmem %s1063_s19, %s1268_s26 [#allocation6]   ;;  %s1083_s27 = scalar_lea.vmem %s1065_s25, %s1268_s26  }
 0x3ff PF: > { %p18_p4 = scmp.ge.s32.totalorder %s1777_s13, 4   ;;  %s2022_s30 = smov %s1669_s10 }
 0x400   : > { %s2023_s10 = smov %s1785_s16  ;;  %s2024_s11 = smov %s1777_s13 }
 0x401   :  { %20 = sbr.rel (!%p18_p4) target bundleno = 3 (0x3), region = 177 }
 0x408   :  { %1099 = vsyncpa [#allocation3], 1 }
 0x409   :  { %1101 = vsyncpa [#allocation3 + $0x1], 1 }
 0x40a   :  { %1102 = vsyncpa [#allocation5], 1 }

</bundles_post_ra>
